<compile_context>
chip_gen: v7x
topology: tpu7x:2x2x1
jax: 0.10.0
libtpu: 0.0.40
codegen_flags: <defaults>
</compile_context>

<pallas_src>
import functools

import numpy as np
import jax
import jax.numpy as jnp
from jax import lax
from jax.experimental import pallas as pl
from jax.experimental.pallas import tpu as pltpu

_BUFFERED = getattr(pl, "Buffered", None)


# ----------------------------------------------------------------------------- kernel
def _window_attention_kernel(x_ref, wqkv_ref, bqkv_ref, wproj_ref, bproj_ref,
                             relbias_ref, mask_ref, o_ref, ocat_ref, *,
                             num_heads, windows_per_block, tokens,
                             mask_windows_per_block):
    # x_ref:       (Bt, N, C)      input dtype; cast to compute dtype in-kernel
    # wqkv_ref:    (C, 3C)         bf16, q columns pre-scaled by head_dim**-0.5
    # bqkv_ref:    (1, 3C)         f32,  q part pre-scaled
    # wproj_ref:   (C, C)          bf16
    # bproj_ref:   (1, C)          f32
    # relbias_ref: (H, N, N)       f32   (resident, single-buffered)
    # mask_ref:    (nW_blk, N, N)  f32   additive 0 / -100 window mask
    # o_ref:       (Bt, N, C)      output
    # ocat_ref:    (Bt*N, C)       VMEM scratch (head re-assembly, compute dtype)
    H = num_heads
    Bt = windows_per_block
    N = tokens
    nW_blk = mask_windows_per_block
    rep = Bt // nW_blk
    R = Bt * N
    C = x_ref.shape[-1]
    hd = C // H
    f32 = jnp.float32
    cdt = wqkv_ref.dtype                                     # matmul operand dtype (bf16)

    # ---- fused QKV projection: one full-width MXU matmul, f32 accumulation ----
    x = x_ref[...].reshape(R, C).astype(cdt)                 # in-kernel cast, no extra HBM pass
    qkv = jnp.dot(x, wqkv_ref[...], preferred_element_type=f32) + bqkv_ref[0]
    qkv = qkv.reshape(Bt, N, 3 * C)                          # leading-dim split (free)

    # ---- fold heads into the leading batch dim: (H*Bt, N, hd) ----
    q = jnp.concatenate([qkv[:, :, h * hd:(h + 1) * hd] for h in range(H)], 0)
    k = jnp.concatenate([qkv[:, :, C + h * hd:C + (h + 1) * hd] for h in range(H)], 0)
    v = jnp.concatenate([qkv[:, :, 2 * C + h * hd:2 * C + (h + 1) * hd] for h in range(H)], 0)
    q = q.astype(cdt)
    k = k.astype(cdt)
    v = v.astype(cdt)

    # ---- single batched QK^T over all (head, window) pairs ----
    s = lax.dot_general(q, k, (((2,), (2,)), ((0,), (0,))),
                        preferred_element_type=f32)          # (H*Bt, N, N)

    # ---- relative-position bias + additive window mask ----
    # leading index of s is h*Bt + r*nW_blk + w == (h*rep + r)*nW_blk + w
    bias = jnp.broadcast_to(relbias_ref[...][:, None], (H, rep, N, N))
    bias = bias.reshape(H * rep, N, N)                       # rel_bias[h], repeated `rep` times
    s = s.reshape(H * rep, nW_blk, N, N)
    s = s + bias[:, None] + mask_ref[...][None]
    s = s.reshape(H * Bt, N, N)

    # ---- numerically-stable softmax; normalization deferred via EUP reciprocal ----
    s = s - jnp.max(s, axis=-1, keepdims=True)
    p = jnp.exp(s)
    inv = pl.reciprocal(jnp.sum(p, axis=-1, keepdims=True), approx=True)

    # ---- single batched P@V ----
    o = lax.dot_general(p.astype(cdt), v, (((2,), (1,)), ((0,), (0,))),
                        preferred_element_type=f32)          # (H*Bt, N, hd)
    o = o * inv

    # ---- re-assemble heads along channels (head-major columns) in VMEM scratch ----
    for h in range(H):
        ocat_ref[:, h * hd:(h + 1) * hd] = (
            o[h * Bt:(h + 1) * Bt].reshape(R, hd).astype(cdt))

    # ---- one full-width (K=C) output projection + bias ----
    out = jnp.dot(ocat_ref[...], wproj_ref[...], preferred_element_type=f32)
    out = out + bproj_ref[0]
    o_ref[...] = out.reshape(Bt, N, C).astype(o_ref.dtype)
    # TODO(synk): attn_drop / proj_drop are identity at p=0.0 (eval); inference-only kernel.


# --------------------------------------------------------------------------- helpers
def _relative_position_index(window_size):
    Wh, Ww = window_size
    coords = np.stack(np.meshgrid(np.arange(Wh), np.arange(Ww), indexing="ij"))
    coords_flatten = coords.reshape(2, -1)                              # (2, N)
    rel = coords_flatten[:, :, None] - coords_flatten[:, None, :]       # (2, N, N)
    rel = rel.transpose(1, 2, 0).astype(np.int64)                       # (N, N, 2)
    rel[:, :, 0] += Wh - 1
    rel[:, :, 1] += Ww - 1
    rel[:, :, 0] *= 2 * Ww - 1
    return rel.sum(-1)                                                  # (N, N)


def precompute_relative_position_bias(rel_pos_table, window_size, num_heads):
    """(H, N, N) bias from the learned table — static per layer, compute once and reuse."""
    Wh, Ww = window_size
    N = Wh * Ww
    rel_idx = jnp.asarray(_relative_position_index(window_size).reshape(-1))
    bias = rel_pos_table[rel_idx].reshape(N, N, num_heads)
    return jnp.transpose(bias, (2, 0, 1)).astype(jnp.float32)


def _divisors(n):
    return [d for d in range(1, n + 1) if n % d == 0]


def _vmem_bytes_estimate(Bt, N, C, H, nW_blk, in_isz, out_isz, c_isz=2):
    """Conservative live-VMEM estimate for one grid step of the kernel above."""
    R = Bt * N
    HB = H * Bt
    io = 2 * R * C * (in_isz + out_isz)                      # double-buffered x / out tiles
    weights = (3 * C * C + C * C) * c_isz + 4 * (4 * C)      # single-buffered residents
    consts = 4 * H * N * N + 2 * 4 * nW_blk * N * N          # rel-bias + (possibly 2x) mask
    scratch = R * C * c_isz                                  # head re-assembly slab
    interm = (4 * R * 3 * C                                  # f32 qkv
              + 3 * R * C * c_isz                            # head-batched q/k/v stacks
              + 3 * 4 * HB * N * N                           # scores / probs / temporaries
              + 2 * 4 * R * C)                               # f32 attention out + projected out
    return io + weights + consts + scratch + interm


def _vmem_policy():
    """(max_rows, Bt-selection budget, vmem_limit cap) per TPU generation."""
    cap = None
    try:
        cap = int(pltpu.get_tpu_info().vmem_capacity_bytes)
    except Exception:
        cap = None
    if cap is not None and cap >= 96 * 2**20:
        # v5e / v6e: 128 MiB physical VMEM -> big tiles, generous scoped limit.
        return 1024, 96 * 2**20, 112 * 2**20
    # v7x (64 MiB per TensorCore) or unknown: conservative budget with headroom.
    return 512, 40 * 2**20, 52 * 2**20


def _choose_windows_per_block(B_, nW, N, C, H, in_isz, out_isz, c_isz,
                              max_rows, vmem_budget):
    """Pick Bt (windows per grid step): a divisor or multiple of nW that divides B_,
    maximizing MXU rows subject to the per-generation row / VMEM budgets, while
    keeping >=2 grid steps when possible (v7x megacore)."""
    B = B_ // nW
    cands = sorted(set(_divisors(nW)) | {k * nW for k in _divisors(B)})
    valid = [bt for bt in cands
             if bt * N <= max(max_rows, N)
             and _vmem_bytes_estimate(bt, N, C, H, min(bt, nW),
                                      in_isz, out_isz, c_isz) <= vmem_budget]
    if not valid:
        valid = [min(cands)]
    bt = max(valid)
    if B_ // bt < 2:
        multi = [b for b in valid if B_ // b >= 2]
        if multi:
            bt = max(multi)
    return bt


# --------------------------------------------------------------------------- wrapper
def window_attention(x, params, window_size, num_heads, mask=None, *,
                     compute_dtype=jnp.bfloat16, rel_bias=None, out_dtype=None):
    """Pallas implementation of WindowAttention.forward.

    x:        (B_, N, C)
    mask:     (nW, N, N) additive mask (0 / large-negative) or None
    rel_bias: optional precomputed (H, N, N) bias (precompute_relative_position_bias)
    """
    B_, N, C = x.shape
    Wh, Ww = window_size
    assert N == Wh * Ww
    assert C % num_heads == 0
    head_dim = C // num_heads
    scale = head_dim ** (-0.5)
    out_dtype = x.dtype if out_dtype is None else out_dtype

    if rel_bias is None:
        rel_bias = precompute_relative_position_bias(
            params["rel_pos_table"], window_size, num_heads)
    rel_bias = rel_bias.astype(jnp.float32)

    if mask is None:
        mask = jnp.zeros((1, N, N), jnp.float32)
    mask = mask.astype(jnp.float32)
    nW = mask.shape[0]
    assert B_ % nW == 0

    # One-time weight transform: fold the qk scale into the Q columns of the
    # fused QKV weight/bias; cast matmul operands to bf16 (f32 accumulation in-kernel).
    col_scale = jnp.concatenate([jnp.full((C,), scale, jnp.float32),
                                 jnp.ones((2 * C,), jnp.float32)])
    wqkv_t = (params["wqkv"].T.astype(jnp.float32) * col_scale[None, :]).astype(compute_dtype)
    bqkv = (params["bqkv"].astype(jnp.float32) * col_scale).reshape(1, 3 * C)
    wproj_t = params["wproj"].T.astype(compute_dtype)                   # (C, C)
    bproj = params["bproj"].astype(jnp.float32).reshape(1, C)

    in_isz = jnp.dtype(x.dtype).itemsize
    out_isz = jnp.dtype(out_dtype).itemsize
    c_isz = jnp.dtype(compute_dtype).itemsize

    # Generation-aware tiling: batch many windows per grid step so the QKV / proj
    # matmuls see large row counts, within the per-generation VMEM budget.
    max_rows, vmem_budget, vmem_cap = _vmem_policy()
    Bt = _choose_windows_per_block(B_, nW, N, C, num_heads, in_isz, out_isz,
                                   c_isz, max_rows, vmem_budget)
    grid = (B_ // Bt,)
    nW_blk = min(Bt, nW)                    # mask windows visible per block
    chunks = nW // nW_blk

    est = _vmem_bytes_estimate(Bt, N, C, num_heads, nW_blk, in_isz, out_isz, c_isz)
    vmem_limit = int(min(vmem_cap, max(32 * 2**20, 2 * est)))

    flops = B_ * (8 * N * C * C + 4 * N * N * C)
    transcendentals = B_ * num_heads * N * (N + 1)
    bytes_accessed = int(B_ * N * C * (in_isz + out_isz) + 4 * C * C * c_isz
                         + rel_bias.size * 4 + mask.size * 4 + 4 * (4 * C))
    cost = pl.CostEstimate(flops=int(flops), transcendentals=int(transcendentals),
                           bytes_accessed=bytes_accessed)

    kernel = functools.partial(
        _window_attention_kernel, num_heads=num_heads, windows_per_block=Bt,
        tokens=N, mask_windows_per_block=nW_blk)

    if nW_blk == nW:
        mask_index = lambda b: (0, 0, 0)    # resident across the whole grid
        mask_resident = True
    else:
        mask_index = lambda b: (b % chunks, 0, 0)
        mask_resident = False

    def build(single_buffer_residents):
        def spec(shape, imap, resident):
            # Resident operands (constant index_map): single-buffer to save VMEM.
            if resident and single_buffer_residents and _BUFFERED is not None:
                return pl.BlockSpec(shape, imap, pipeline_mode=_BUFFERED(1))
            return pl.BlockSpec(shape, imap)

        grid_spec = pltpu.PrefetchScalarGridSpec(
            num_scalar_prefetch=0,
            grid=grid,
            in_specs=[
                pl.BlockSpec((Bt, N, C), lambda b: (b, 0, 0)),          # x tile
                spec((C, 3 * C), lambda b: (0, 0), True),               # wqkv^T
                spec((1, 3 * C), lambda b: (0, 0), True),               # bqkv
                spec((C, C), lambda b: (0, 0), True),                   # wproj^T
                spec((1, C), lambda b: (0, 0), True),                   # bproj
                spec((num_heads, N, N), lambda b: (0, 0, 0), True),     # rel-pos bias
                spec((nW_blk, N, N), mask_index, mask_resident),        # window mask
            ],
            out_specs=pl.BlockSpec((Bt, N, C), lambda b: (b, 0, 0)),
            scratch_shapes=[pltpu.VMEM((Bt * N, C), compute_dtype)],
        )
        return pl.pallas_call(
            kernel,
            out_shape=jax.ShapeDtypeStruct((B_, N, C), out_dtype),
            grid_spec=grid_spec,
            compiler_params=pltpu.CompilerParams(
                dimension_semantics=("parallel",),
                vmem_limit_bytes=vmem_limit),
            cost_estimate=cost,
        )

    args = (x, wqkv_t, bqkv, wproj_t, bproj, rel_bias, mask)
    try:
        return build(True)(*args)
    except Exception:
        # Fallback: default double-buffered resident operands (in case
        # pipeline_mode/Buffered is unavailable on this JAX build).
        return build(False)(*args)


# ------------------------------------------------------------------------- reference
def window_attention_reference(x, params, window_size, num_heads, mask=None):
    """Pure-JAX (f32) reference mirroring the PyTorch forward."""
    B_, N, C = x.shape
    head_dim = C // num_heads
    scale = head_dim ** (-0.5)

    qkv = x @ params["wqkv"].T + params["bqkv"]                     # (B_, N, 3C)
    qkv = qkv.reshape(B_, N, 3, num_heads, head_dim).transpose(2, 0, 3, 1, 4)
    q, k, v = qkv[0], qkv[1], qkv[2]                                # (B_, H, N, hd)
    q = q * scale
    attn = jnp.einsum("bhnd,bhmd->bhnm", q, k)                      # (B_, H, N, N)

    rel_bias = precompute_relative_position_bias(
        params["rel_pos_table"], window_size, num_heads)            # (H, N, N)
    attn = attn + rel_bias[None]

    if mask is not None:
        nW = mask.shape[0]
        attn = attn.reshape(B_ // nW, nW, num_heads, N, N) + mask[None, :, None]
        attn = attn.reshape(B_, num_heads, N, N)
    attn = jax.nn.softmax(attn, axis=-1)
    out = jnp.einsum("bhnm,bhmd->bhnd", attn, v)                    # (B_, H, N, hd)
    out = out.transpose(0, 2, 1, 3).reshape(B_, N, C)
    return out @ params["wproj"].T + params["bproj"]


# ------------------------------------------------------------------------------ main
if __name__ == "__main__":
    # Small deterministic config: dim=32, heads=2, window 4x4 (N=16),
    # B=2 batches * nW=4 windows -> B_=8 windows total.
    dim = 32
    num_heads = 2
    window_size = (4, 4)
    N = window_size[0] * window_size[1]
    nW = 4
    B = 2
    B_ = B * nW

    key = jax.random.PRNGKey(0)
    k_x, k_tbl, k_wqkv, k_bqkv, k_wproj, k_bproj, k_mask = jax.random.split(key, 7)

    x = jax.random.normal(k_x, (B_, N, dim), jnp.float32)

    num_rel = (2 * window_size[0] - 1) * (2 * window_size[1] - 1)
    params = {
        "rel_pos_table": 0.02 * jax.random.truncated_normal(
            k_tbl, -2.0, 2.0, (num_rel, num_heads), jnp.float32),
        "wqkv": 0.02 * jax.random.normal(k_wqkv, (3 * dim, dim), jnp.float32),
        "bqkv": 0.02 * jax.random.normal(k_bqkv, (3 * dim,), jnp.float32),
        "wproj": 0.02 * jax.random.normal(k_wproj, (dim, dim), jnp.float32),
        "bproj": 0.02 * jax.random.normal(k_bproj, (dim,), jnp.float32),
    }

    # 0 / -100 additive window mask (Swin shifted-window convention).
    mask_bits = jax.random.bernoulli(k_mask, 0.3, (nW, N, N))
    mask = jnp.where(mask_bits, -100.0, 0.0).astype(jnp.float32)

    # Hoisted per-layer precompute of the relative-position bias (feedback item).
    rel_bias = precompute_relative_position_bias(
        params["rel_pos_table"], window_size, num_heads)

    out = window_attention(x, params, window_size, num_heads, mask=mask,
                           rel_bias=rel_bias)
    out = jax.block_until_ready(out)

    ref = window_attention_reference(x, params, window_size, num_heads, mask=mask)
    # Tolerance widened vs. pure-f32 because matmul operands run in bf16
    # (f32 accumulation) and the softmax denominator uses the EUP approximate
    # reciprocal.
    np.testing.assert_allclose(np.asarray(out), np.asarray(ref), rtol=2e-2, atol=3e-3)

    print("KERNEL_OK")
</pallas_src>

<mosaic_0001>
module attributes {stable_mosaic.version = 11 : i64} {
  func.func @_window_attention_kernel(%arg0: i32, %arg1: memref<4x16x32xf32, #tpu.memory_space<vmem>>, %arg2: memref<32x96xbf16, #tpu.memory_space<vmem>>, %arg3: memref<1x96xf32, #tpu.memory_space<vmem>>, %arg4: memref<32x32xbf16, #tpu.memory_space<vmem>>, %arg5: memref<1x32xf32, #tpu.memory_space<vmem>>, %arg6: memref<2x16x16xf32, #tpu.memory_space<vmem>>, %arg7: memref<4x16x16xf32, #tpu.memory_space<vmem>>, %arg8: memref<4x16x32xf32, #tpu.memory_space<vmem>>, %arg9: memref<64x32xbf16, #tpu.memory_space<vmem>>) attributes {dimension_semantics = [#tpu.dimension_semantics<parallel>], iteration_bounds = array<i64: 2>, scalar_prefetch = 0 : i64, scratch_operands = 1 : i64, tpu.core_type = #tpu.core_type<tc>, window_params = [{transform_indices = @transform_0, window_bounds = array<i64: 4, 16, 32>}, {pipeline_mode = #tpu.pipeline_mode<synchronous>, transform_indices = @transform_1, window_bounds = array<i64: 32, 96>}, {pipeline_mode = #tpu.pipeline_mode<synchronous>, transform_indices = @transform_2, window_bounds = array<i64: 1, 96>}, {pipeline_mode = #tpu.pipeline_mode<synchronous>, transform_indices = @transform_3, window_bounds = array<i64: 32, 32>}, {pipeline_mode = #tpu.pipeline_mode<synchronous>, transform_indices = @transform_4, window_bounds = array<i64: 1, 32>}, {pipeline_mode = #tpu.pipeline_mode<synchronous>, transform_indices = @transform_5, window_bounds = array<i64: 2, 16, 16>}, {pipeline_mode = #tpu.pipeline_mode<synchronous>, transform_indices = @transform_6, window_bounds = array<i64: 4, 16, 16>}, {transform_indices = @transform_7, window_bounds = array<i64: 4, 16, 32>}]} {
    %c0 = arith.constant 0 : index
    %c0_0 = arith.constant 0 : index
    %c0_1 = arith.constant 0 : index
    %0 = vector.load %arg1[%c0, %c0_0, %c0_1] : memref<4x16x32xf32, #tpu.memory_space<vmem>>, vector<4x16x32xf32>
    %1 = vector.shape_cast %0 : vector<4x16x32xf32> to vector<64x32xf32>
    %2 = arith.truncf %1 : vector<64x32xf32> to vector<64x32xbf16>
    %c0_2 = arith.constant 0 : index
    %c0_3 = arith.constant 0 : index
    %3 = vector.load %arg2[%c0_2, %c0_3] : memref<32x96xbf16, #tpu.memory_space<vmem>>, vector<32x96xbf16>
    %cst = arith.constant dense<0.000000e+00> : vector<64x96xf32>
    %4 = tpu.matmul %2, %3, %cst {dimension_numbers = #tpu.dot_dimension_numbers<[1], [0], [0], [1], [0, 0, 1, 1], [], []>} : vector<64x32xbf16>, vector<32x96xbf16>, vector<64x96xf32> -> vector<64x96xf32>
    %c0_4 = arith.constant 0 : index
    %c0_5 = arith.constant 0 : index
    %5 = vector.load %arg3[%c0_4, %c0_5] : memref<1x96xf32, #tpu.memory_space<vmem>>, vector<1x96xf32>
    %6 = vector.shape_cast %5 : vector<1x96xf32> to vector<96xf32>
    %7 = vector.shape_cast %6 : vector<96xf32> to vector<1x96xf32>
    %8 = vector.broadcast %7 : vector<1x96xf32> to vector<64x96xf32>
    %9 = arith.addf %4, %8 : vector<64x96xf32>
    %10 = vector.shape_cast %9 : vector<64x96xf32> to vector<4x16x96xf32>
    %11 = vector.extract_strided_slice %10 {offsets = [0, 0, 0], sizes = [4, 16, 16], strides = [1, 1, 1]} : vector<4x16x96xf32> to vector<4x16x16xf32>
    %12 = vector.extract_strided_slice %10 {offsets = [0, 0, 16], sizes = [4, 16, 16], strides = [1, 1, 1]} : vector<4x16x96xf32> to vector<4x16x16xf32>
    %13 = tpu.concatenate %11, %12 in 0 : vector<4x16x16xf32>, vector<4x16x16xf32> -> vector<8x16x16xf32>
    %14 = vector.extract_strided_slice %10 {offsets = [0, 0, 32], sizes = [4, 16, 16], strides = [1, 1, 1]} : vector<4x16x96xf32> to vector<4x16x16xf32>
    %15 = vector.extract_strided_slice %10 {offsets = [0, 0, 48], sizes = [4, 16, 16], strides = [1, 1, 1]} : vector<4x16x96xf32> to vector<4x16x16xf32>
    %16 = tpu.concatenate %14, %15 in 0 : vector<4x16x16xf32>, vector<4x16x16xf32> -> vector<8x16x16xf32>
    %17 = vector.extract_strided_slice %10 {offsets = [0, 0, 64], sizes = [4, 16, 16], strides = [1, 1, 1]} : vector<4x16x96xf32> to vector<4x16x16xf32>
    %18 = vector.extract_strided_slice %10 {offsets = [0, 0, 80], sizes = [4, 16, 16], strides = [1, 1, 1]} : vector<4x16x96xf32> to vector<4x16x16xf32>
    %19 = tpu.concatenate %17, %18 in 0 : vector<4x16x16xf32>, vector<4x16x16xf32> -> vector<8x16x16xf32>
    %20 = arith.truncf %13 : vector<8x16x16xf32> to vector<8x16x16xbf16>
    %21 = arith.truncf %16 : vector<8x16x16xf32> to vector<8x16x16xbf16>
    %22 = arith.truncf %19 : vector<8x16x16xf32> to vector<8x16x16xbf16>
    %cst_6 = arith.constant dense<0.000000e+00> : vector<8x16x16xf32>
    %23 = tpu.matmul %20, %21, %cst_6 {dimension_numbers = #tpu.dot_dimension_numbers<[2], [2], [1], [1], [0, 0, 0, 1, 1, 1], [0], [0]>} : vector<8x16x16xbf16>, vector<8x16x16xbf16>, vector<8x16x16xf32> -> vector<8x16x16xf32>
    %c0_7 = arith.constant 0 : index
    %c0_8 = arith.constant 0 : index
    %c0_9 = arith.constant 0 : index
    %24 = vector.load %arg6[%c0_7, %c0_8, %c0_9] : memref<2x16x16xf32, #tpu.memory_space<vmem>>, vector<2x16x16xf32>
    %25 = vector.shape_cast %24 : vector<2x16x16xf32> to vector<2x1x16x16xf32>
    %26 = vector.shape_cast %25 : vector<2x1x16x16xf32> to vector<2x16x16xf32>
    %27 = vector.shape_cast %23 : vector<8x16x16xf32> to vector<2x4x16x16xf32>
    %28 = vector.shape_cast %26 : vector<2x16x16xf32> to vector<2x1x16x16xf32>
    %29 = vector.broadcast %28 : vector<2x1x16x16xf32> to vector<2x4x16x16xf32>
    %30 = arith.addf %27, %29 : vector<2x4x16x16xf32>
    %c0_10 = arith.constant 0 : index
    %c0_11 = arith.constant 0 : index
    %c0_12 = arith.constant 0 : index
    %31 = vector.load %arg7[%c0_10, %c0_11, %c0_12] : memref<4x16x16xf32, #tpu.memory_space<vmem>>, vector<4x16x16xf32>
    %32 = vector.shape_cast %31 : vector<4x16x16xf32> to vector<1x4x16x16xf32>
    %33 = vector.broadcast %32 : vector<1x4x16x16xf32> to vector<2x4x16x16xf32>
    %34 = arith.addf %30, %33 : vector<2x4x16x16xf32>
    %35 = vector.shape_cast %34 : vector<2x4x16x16xf32> to vector<8x16x16xf32>
    %cst_13 = arith.constant dense<0xFF800000> : vector<8x16xf32>
    %36 = vector.multi_reduction <maximumf>, %35, %cst_13 [2] : vector<8x16x16xf32> to vector<8x16xf32>
    %37 = vector.shape_cast %36 : vector<8x16xf32> to vector<8x16x1xf32>
    %38 = vector.broadcast %37 : vector<8x16x1xf32> to vector<8x16x16xf32>
    %39 = arith.subf %35, %38 : vector<8x16x16xf32>
    %40 = math.exp %39 : vector<8x16x16xf32>
    %cst_14 = arith.constant dense<0.000000e+00> : vector<8x16xf32>
    %41 = vector.multi_reduction <add>, %40, %cst_14 [2] : vector<8x16x16xf32> to vector<8x16xf32>
    %42 = vector.shape_cast %41 : vector<8x16xf32> to vector<8x16x1xf32>
    %43 = tpu.reciprocal %42 {approx = true} : vector<8x16x1xf32> -> vector<8x16x1xf32>
    %44 = arith.truncf %40 : vector<8x16x16xf32> to vector<8x16x16xbf16>
    %cst_15 = arith.constant dense<0.000000e+00> : vector<8x16x16xf32>
    %45 = tpu.matmul %44, %22, %cst_15 {dimension_numbers = #tpu.dot_dimension_numbers<[2], [1], [1], [2], [0, 0, 0, 1, 1, 2], [0], [0]>} : vector<8x16x16xbf16>, vector<8x16x16xbf16>, vector<8x16x16xf32> -> vector<8x16x16xf32>
    %46 = vector.broadcast %43 : vector<8x16x1xf32> to vector<8x16x16xf32>
    %47 = arith.mulf %45, %46 : vector<8x16x16xf32>
    %48 = vector.extract_strided_slice %47 {offsets = [0, 0, 0], sizes = [4, 16, 16], strides = [1, 1, 1]} : vector<8x16x16xf32> to vector<4x16x16xf32>
    %49 = vector.shape_cast %48 : vector<4x16x16xf32> to vector<64x16xf32>
    %50 = arith.truncf %49 : vector<64x16xf32> to vector<64x16xbf16>
    %c0_16 = arith.constant 0 : index
    %c0_17 = arith.constant 0 : index
    %51 = vector.load %arg9[%c0_16, %c0_17] : memref<64x32xbf16, #tpu.memory_space<vmem>>, vector<64x16xbf16>
    tpu.vector_store %arg9[%c0_16, %c0_17], %50 {strides = array<i32>} : memref<64x32xbf16, #tpu.memory_space<vmem>>, vector<64x16xbf16>,
    %52 = vector.extract_strided_slice %47 {offsets = [4, 0, 0], sizes = [4, 16, 16], strides = [1, 1, 1]} : vector<8x16x16xf32> to vector<4x16x16xf32>
    %53 = vector.shape_cast %52 : vector<4x16x16xf32> to vector<64x16xf32>
    %54 = arith.truncf %53 : vector<64x16xf32> to vector<64x16xbf16>
    %c0_18 = arith.constant 0 : index
    %c16 = arith.constant 16 : index
    %55 = vector.load %arg9[%c0_18, %c16] : memref<64x32xbf16, #tpu.memory_space<vmem>>, vector<64x16xbf16>
    tpu.vector_store %arg9[%c0_18, %c16], %54 {strides = array<i32>} : memref<64x32xbf16, #tpu.memory_space<vmem>>, vector<64x16xbf16>,
    %c0_19 = arith.constant 0 : index
    %c0_20 = arith.constant 0 : index
    %56 = vector.load %arg9[%c0_19, %c0_20] : memref<64x32xbf16, #tpu.memory_space<vmem>>, vector<64x32xbf16>
    %c0_21 = arith.constant 0 : index
    %c0_22 = arith.constant 0 : index
    %57 = vector.load %arg4[%c0_21, %c0_22] : memref<32x32xbf16, #tpu.memory_space<vmem>>, vector<32x32xbf16>
    %cst_23 = arith.constant dense<0.000000e+00> : vector<64x32xf32>
    %58 = tpu.matmul %56, %57, %cst_23 {dimension_numbers = #tpu.dot_dimension_numbers<[1], [0], [0], [1], [0, 0, 1, 1], [], []>} : vector<64x32xbf16>, vector<32x32xbf16>, vector<64x32xf32> -> vector<64x32xf32>
    %c0_24 = arith.constant 0 : index
    %c0_25 = arith.constant 0 : index
    %59 = vector.load %arg5[%c0_24, %c0_25] : memref<1x32xf32, #tpu.memory_space<vmem>>, vector<1x32xf32>
    %60 = vector.shape_cast %59 : vector<1x32xf32> to vector<32xf32>
    %61 = vector.shape_cast %60 : vector<32xf32> to vector<1x32xf32>
    %62 = vector.broadcast %61 : vector<1x32xf32> to vector<64x32xf32>
    %63 = arith.addf %58, %62 : vector<64x32xf32>
    %64 = vector.shape_cast %63 : vector<64x32xf32> to vector<4x16x32xf32>
    %c0_26 = arith.constant 0 : index
    %c0_27 = arith.constant 0 : index
    %c0_28 = arith.constant 0 : index
    %65 = vector.load %arg8[%c0_26, %c0_27, %c0_28] : memref<4x16x32xf32, #tpu.memory_space<vmem>>, vector<4x16x32xf32>
    tpu.vector_store %arg8[%c0_26, %c0_27, %c0_28], %64 {strides = array<i32>} : memref<4x16x32xf32, #tpu.memory_space<vmem>>, vector<4x16x32xf32>,
    return
  }
  func.func @transform_0(%arg0: i32) -> (i32, i32, i32) {
    %c0_i32 = arith.constant 0 : i32
    %c0_i32_0 = arith.constant 0 : i32
    %c0_i32_1 = arith.constant 0 : i32
    return %arg0, %c0_i32, %c0_i32_0 : i32, i32, i32
  }
  func.func @transform_1(%arg0: i32) -> (i32, i32) {
    %c0_i32 = arith.constant 0 : i32
    %c0_i32_0 = arith.constant 0 : i32
    %c0_i32_1 = arith.constant 0 : i32
    return %c0_i32, %c0_i32_0 : i32, i32
  }
  func.func @transform_2(%arg0: i32) -> (i32, i32) {
    %c0_i32 = arith.constant 0 : i32
    %c0_i32_0 = arith.constant 0 : i32
    %c0_i32_1 = arith.constant 0 : i32
    return %c0_i32, %c0_i32_0 : i32, i32
  }
  func.func @transform_3(%arg0: i32) -> (i32, i32) {
    %c0_i32 = arith.constant 0 : i32
    %c0_i32_0 = arith.constant 0 : i32
    %c0_i32_1 = arith.constant 0 : i32
    return %c0_i32, %c0_i32_0 : i32, i32
  }
  func.func @transform_4(%arg0: i32) -> (i32, i32) {
    %c0_i32 = arith.constant 0 : i32
    %c0_i32_0 = arith.constant 0 : i32
    %c0_i32_1 = arith.constant 0 : i32
    return %c0_i32, %c0_i32_0 : i32, i32
  }
  func.func @transform_5(%arg0: i32) -> (i32, i32, i32) {
    %c0_i32 = arith.constant 0 : i32
    %c0_i32_0 = arith.constant 0 : i32
    %c0_i32_1 = arith.constant 0 : i32
    %c0_i32_2 = arith.constant 0 : i32
    return %c0_i32, %c0_i32_0, %c0_i32_1 : i32, i32, i32
  }
  func.func @transform_6(%arg0: i32) -> (i32, i32, i32) {
    %c0_i32 = arith.constant 0 : i32
    %c0_i32_0 = arith.constant 0 : i32
    %c0_i32_1 = arith.constant 0 : i32
    %c0_i32_2 = arith.constant 0 : i32
    return %c0_i32, %c0_i32_0, %c0_i32_1 : i32, i32, i32
  }
  func.func @transform_7(%arg0: i32) -> (i32, i32, i32) {
    %c0_i32 = arith.constant 0 : i32
    %c0_i32_0 = arith.constant 0 : i32
    %c0_i32_1 = arith.constant 0 : i32
    return %arg0, %c0_i32, %c0_i32_0 : i32, i32, i32
  }
}

module attributes {stable_mosaic.version = 11 : i64} {
  func.func @_window_attention_kernel(%arg0: i32, %arg1: memref<4x16x32xf32, #tpu.memory_space<vmem>>, %arg2: memref<32x96xbf16, #tpu.memory_space<vmem>>, %arg3: memref<1x96xf32, #tpu.memory_space<vmem>>, %arg4: memref<32x32xbf16, #tpu.memory_space<vmem>>, %arg5: memref<1x32xf32, #tpu.memory_space<vmem>>, %arg6: memref<2x16x16xf32, #tpu.memory_space<vmem>>, %arg7: memref<4x16x16xf32, #tpu.memory_space<vmem>>, %arg8: memref<4x16x32xf32, #tpu.memory_space<vmem>>, %arg9: memref<64x32xbf16, #tpu.memory_space<vmem>>) attributes {dimension_semantics = [#tpu.dimension_semantics<parallel>], iteration_bounds = array<i64: 2>, scalar_prefetch = 0 : i64, scratch_operands = 1 : i64, tpu.core_type = #tpu.core_type<tc>, window_params = [{transform_indices = @transform_0, window_bounds = array<i64: 4, 16, 32>}, {pipeline_mode = #tpu.pipeline_mode<synchronous>, transform_indices = @transform_1, window_bounds = array<i64: 32, 96>}, {pipeline_mode = #tpu.pipeline_mode<synchronous>, transform_indices = @transform_2, window_bounds = array<i64: 1, 96>}, {pipeline_mode = #tpu.pipeline_mode<synchronous>, transform_indices = @transform_3, window_bounds = array<i64: 32, 32>}, {pipeline_mode = #tpu.pipeline_mode<synchronous>, transform_indices = @transform_4, window_bounds = array<i64: 1, 32>}, {pipeline_mode = #tpu.pipeline_mode<synchronous>, transform_indices = @transform_5, window_bounds = array<i64: 2, 16, 16>}, {pipeline_mode = #tpu.pipeline_mode<synchronous>, transform_indices = @transform_6, window_bounds = array<i64: 4, 16, 16>}, {transform_indices = @transform_7, window_bounds = array<i64: 4, 16, 32>}]} {
    %c0 = arith.constant 0 : index
    %c0_0 = arith.constant 0 : index
    %c0_1 = arith.constant 0 : index
    %0 = vector.load %arg1[%c0, %c0_0, %c0_1] : memref<4x16x32xf32, #tpu.memory_space<vmem>>, vector<4x16x32xf32>
    %1 = vector.shape_cast %0 : vector<4x16x32xf32> to vector<64x32xf32>
    %2 = arith.truncf %1 : vector<64x32xf32> to vector<64x32xbf16>
    %c0_2 = arith.constant 0 : index
    %c0_3 = arith.constant 0 : index
    %3 = vector.load %arg2[%c0_2, %c0_3] : memref<32x96xbf16, #tpu.memory_space<vmem>>, vector<32x96xbf16>
    %cst = arith.constant dense<0.000000e+00> : vector<64x96xf32>
    %4 = tpu.matmul %2, %3, %cst {dimension_numbers = #tpu.dot_dimension_numbers<[1], [0], [0], [1], [0, 0, 1, 1], [], []>} : vector<64x32xbf16>, vector<32x96xbf16>, vector<64x96xf32> -> vector<64x96xf32>
    %c0_4 = arith.constant 0 : index
    %c0_5 = arith.constant 0 : index
    %5 = vector.load %arg3[%c0_4, %c0_5] : memref<1x96xf32, #tpu.memory_space<vmem>>, vector<1x96xf32>
    %6 = vector.shape_cast %5 : vector<1x96xf32> to vector<96xf32>
    %7 = vector.shape_cast %6 : vector<96xf32> to vector<1x96xf32>
    %8 = vector.broadcast %7 : vector<1x96xf32> to vector<64x96xf32>
    %9 = arith.addf %4, %8 : vector<64x96xf32>
    %10 = vector.shape_cast %9 : vector<64x96xf32> to vector<4x16x96xf32>
    %11 = vector.extract_strided_slice %10 {offsets = [0, 0, 0], sizes = [4, 16, 16], strides = [1, 1, 1]} : vector<4x16x96xf32> to vector<4x16x16xf32>
    %12 = vector.extract_strided_slice %10 {offsets = [0, 0, 16], sizes = [4, 16, 16], strides = [1, 1, 1]} : vector<4x16x96xf32> to vector<4x16x16xf32>
    %13 = tpu.concatenate %11, %12 in 0 : vector<4x16x16xf32>, vector<4x16x16xf32> -> vector<8x16x16xf32>
    %14 = vector.extract_strided_slice %10 {offsets = [0, 0, 32], sizes = [4, 16, 16], strides = [1, 1, 1]} : vector<4x16x96xf32> to vector<4x16x16xf32>
    %15 = vector.extract_strided_slice %10 {offsets = [0, 0, 48], sizes = [4, 16, 16], strides = [1, 1, 1]} : vector<4x16x96xf32> to vector<4x16x16xf32>
    %16 = tpu.concatenate %14, %15 in 0 : vector<4x16x16xf32>, vector<4x16x16xf32> -> vector<8x16x16xf32>
    %17 = vector.extract_strided_slice %10 {offsets = [0, 0, 64], sizes = [4, 16, 16], strides = [1, 1, 1]} : vector<4x16x96xf32> to vector<4x16x16xf32>
    %18 = vector.extract_strided_slice %10 {offsets = [0, 0, 80], sizes = [4, 16, 16], strides = [1, 1, 1]} : vector<4x16x96xf32> to vector<4x16x16xf32>
    %19 = tpu.concatenate %17, %18 in 0 : vector<4x16x16xf32>, vector<4x16x16xf32> -> vector<8x16x16xf32>
    %20 = arith.truncf %13 : vector<8x16x16xf32> to vector<8x16x16xbf16>
    %21 = arith.truncf %16 : vector<8x16x16xf32> to vector<8x16x16xbf16>
    %22 = arith.truncf %19 : vector<8x16x16xf32> to vector<8x16x16xbf16>
    %cst_6 = arith.constant dense<0.000000e+00> : vector<8x16x16xf32>
    %23 = tpu.matmul %20, %21, %cst_6 {dimension_numbers = #tpu.dot_dimension_numbers<[2], [2], [1], [1], [0, 0, 0, 1, 1, 1], [0], [0]>} : vector<8x16x16xbf16>, vector<8x16x16xbf16>, vector<8x16x16xf32> -> vector<8x16x16xf32>
    %c0_7 = arith.constant 0 : index
    %c0_8 = arith.constant 0 : index
    %c0_9 = arith.constant 0 : index
    %24 = vector.load %arg6[%c0_7, %c0_8, %c0_9] : memref<2x16x16xf32, #tpu.memory_space<vmem>>, vector<2x16x16xf32>
    %25 = vector.shape_cast %24 : vector<2x16x16xf32> to vector<2x1x16x16xf32>
    %26 = vector.shape_cast %25 : vector<2x1x16x16xf32> to vector<2x16x16xf32>
    %27 = vector.shape_cast %23 : vector<8x16x16xf32> to vector<2x4x16x16xf32>
    %28 = vector.shape_cast %26 : vector<2x16x16xf32> to vector<2x1x16x16xf32>
    %29 = vector.broadcast %28 : vector<2x1x16x16xf32> to vector<2x4x16x16xf32>
    %30 = arith.addf %27, %29 : vector<2x4x16x16xf32>
    %c0_10 = arith.constant 0 : index
    %c0_11 = arith.constant 0 : index
    %c0_12 = arith.constant 0 : index
    %31 = vector.load %arg7[%c0_10, %c0_11, %c0_12] : memref<4x16x16xf32, #tpu.memory_space<vmem>>, vector<4x16x16xf32>
    %32 = vector.shape_cast %31 : vector<4x16x16xf32> to vector<1x4x16x16xf32>
    %33 = vector.broadcast %32 : vector<1x4x16x16xf32> to vector<2x4x16x16xf32>
    %34 = arith.addf %30, %33 : vector<2x4x16x16xf32>
    %35 = vector.shape_cast %34 : vector<2x4x16x16xf32> to vector<8x16x16xf32>
    %cst_13 = arith.constant dense<0xFF800000> : vector<8x16xf32>
    %36 = vector.multi_reduction <maximumf>, %35, %cst_13 [2] : vector<8x16x16xf32> to vector<8x16xf32>
    %37 = vector.shape_cast %36 : vector<8x16xf32> to vector<8x16x1xf32>
    %38 = vector.broadcast %37 : vector<8x16x1xf32> to vector<8x16x16xf32>
    %39 = arith.subf %35, %38 : vector<8x16x16xf32>
    %40 = math.exp %39 : vector<8x16x16xf32>
    %cst_14 = arith.constant dense<0.000000e+00> : vector<8x16xf32>
    %41 = vector.multi_reduction <add>, %40, %cst_14 [2] : vector<8x16x16xf32> to vector<8x16xf32>
    %42 = vector.shape_cast %41 : vector<8x16xf32> to vector<8x16x1xf32>
    %43 = tpu.reciprocal %42 {approx = true} : vector<8x16x1xf32> -> vector<8x16x1xf32>
    %44 = arith.truncf %40 : vector<8x16x16xf32> to vector<8x16x16xbf16>
    %cst_15 = arith.constant dense<0.000000e+00> : vector<8x16x16xf32>
    %45 = tpu.matmul %44, %22, %cst_15 {dimension_numbers = #tpu.dot_dimension_numbers<[2], [1], [1], [2], [0, 0, 0, 1, 1, 2], [0], [0]>} : vector<8x16x16xbf16>, vector<8x16x16xbf16>, vector<8x16x16xf32> -> vector<8x16x16xf32>
    %46 = vector.broadcast %43 : vector<8x16x1xf32> to vector<8x16x16xf32>
    %47 = arith.mulf %45, %46 : vector<8x16x16xf32>
    %48 = vector.extract_strided_slice %47 {offsets = [0, 0, 0], sizes = [4, 16, 16], strides = [1, 1, 1]} : vector<8x16x16xf32> to vector<4x16x16xf32>
    %49 = vector.shape_cast %48 : vector<4x16x16xf32> to vector<64x16xf32>
    %50 = arith.truncf %49 : vector<64x16xf32> to vector<64x16xbf16>
    %c0_16 = arith.constant 0 : index
    %c0_17 = arith.constant 0 : index
    %51 = vector.load %arg9[%c0_16, %c0_17] : memref<64x32xbf16, #tpu.memory_space<vmem>>, vector<64x16xbf16>
    tpu.vector_store %arg9[%c0_16, %c0_17], %50 {strides = array<i32>} : memref<64x32xbf16, #tpu.memory_space<vmem>>, vector<64x16xbf16>,
    %52 = vector.extract_strided_slice %47 {offsets = [4, 0, 0], sizes = [4, 16, 16], strides = [1, 1, 1]} : vector<8x16x16xf32> to vector<4x16x16xf32>
    %53 = vector.shape_cast %52 : vector<4x16x16xf32> to vector<64x16xf32>
    %54 = arith.truncf %53 : vector<64x16xf32> to vector<64x16xbf16>
    %c0_18 = arith.constant 0 : index
    %c16 = arith.constant 16 : index
    %55 = vector.load %arg9[%c0_18, %c16] : memref<64x32xbf16, #tpu.memory_space<vmem>>, vector<64x16xbf16>
    tpu.vector_store %arg9[%c0_18, %c16], %54 {strides = array<i32>} : memref<64x32xbf16, #tpu.memory_space<vmem>>, vector<64x16xbf16>,
    %c0_19 = arith.constant 0 : index
    %c0_20 = arith.constant 0 : index
    %56 = vector.load %arg9[%c0_19, %c0_20] : memref<64x32xbf16, #tpu.memory_space<vmem>>, vector<64x32xbf16>
    %c0_21 = arith.constant 0 : index
    %c0_22 = arith.constant 0 : index
    %57 = vector.load %arg4[%c0_21, %c0_22] : memref<32x32xbf16, #tpu.memory_space<vmem>>, vector<32x32xbf16>
    %cst_23 = arith.constant dense<0.000000e+00> : vector<64x32xf32>
    %58 = tpu.matmul %56, %57, %cst_23 {dimension_numbers = #tpu.dot_dimension_numbers<[1], [0], [0], [1], [0, 0, 1, 1], [], []>} : vector<64x32xbf16>, vector<32x32xbf16>, vector<64x32xf32> -> vector<64x32xf32>
    %c0_24 = arith.constant 0 : index
    %c0_25 = arith.constant 0 : index
    %59 = vector.load %arg5[%c0_24, %c0_25] : memref<1x32xf32, #tpu.memory_space<vmem>>, vector<1x32xf32>
    %60 = vector.shape_cast %59 : vector<1x32xf32> to vector<32xf32>
    %61 = vector.shape_cast %60 : vector<32xf32> to vector<1x32xf32>
    %62 = vector.broadcast %61 : vector<1x32xf32> to vector<64x32xf32>
    %63 = arith.addf %58, %62 : vector<64x32xf32>
    %64 = vector.shape_cast %63 : vector<64x32xf32> to vector<4x16x32xf32>
    %c0_26 = arith.constant 0 : index
    %c0_27 = arith.constant 0 : index
    %c0_28 = arith.constant 0 : index
    %65 = vector.load %arg8[%c0_26, %c0_27, %c0_28] : memref<4x16x32xf32, #tpu.memory_space<vmem>>, vector<4x16x32xf32>
    tpu.vector_store %arg8[%c0_26, %c0_27, %c0_28], %64 {strides = array<i32>} : memref<4x16x32xf32, #tpu.memory_space<vmem>>, vector<4x16x32xf32>,
    return
  }
  func.func @transform_0(%arg0: i32) -> (i32, i32, i32) {
    %c0_i32 = arith.constant 0 : i32
    %c0_i32_0 = arith.constant 0 : i32
    %c0_i32_1 = arith.constant 0 : i32
    return %arg0, %c0_i32, %c0_i32_0 : i32, i32, i32
  }
  func.func @transform_1(%arg0: i32) -> (i32, i32) {
    %c0_i32 = arith.constant 0 : i32
    %c0_i32_0 = arith.constant 0 : i32
    %c0_i32_1 = arith.constant 0 : i32
    return %c0_i32, %c0_i32_0 : i32, i32
  }
  func.func @transform_2(%arg0: i32) -> (i32, i32) {
    %c0_i32 = arith.constant 0 : i32
    %c0_i32_0 = arith.constant 0 : i32
    %c0_i32_1 = arith.constant 0 : i32
    return %c0_i32, %c0_i32_0 : i32, i32
  }
  func.func @transform_3(%arg0: i32) -> (i32, i32) {
    %c0_i32 = arith.constant 0 : i32
    %c0_i32_0 = arith.constant 0 : i32
    %c0_i32_1 = arith.constant 0 : i32
    return %c0_i32, %c0_i32_0 : i32, i32
  }
  func.func @transform_4(%arg0: i32) -> (i32, i32) {
    %c0_i32 = arith.constant 0 : i32
    %c0_i32_0 = arith.constant 0 : i32
    %c0_i32_1 = arith.constant 0 : i32
    return %c0_i32, %c0_i32_0 : i32, i32
  }
  func.func @transform_5(%arg0: i32) -> (i32, i32, i32) {
    %c0_i32 = arith.constant 0 : i32
    %c0_i32_0 = arith.constant 0 : i32
    %c0_i32_1 = arith.constant 0 : i32
    %c0_i32_2 = arith.constant 0 : i32
    return %c0_i32, %c0_i32_0, %c0_i32_1 : i32, i32, i32
  }
  func.func @transform_6(%arg0: i32) -> (i32, i32, i32) {
    %c0_i32 = arith.constant 0 : i32
    %c0_i32_0 = arith.constant 0 : i32
    %c0_i32_1 = arith.constant 0 : i32
    %c0_i32_2 = arith.constant 0 : i32
    return %c0_i32, %c0_i32_0, %c0_i32_1 : i32, i32, i32
  }
  func.func @transform_7(%arg0: i32) -> (i32, i32, i32) {
    %c0_i32 = arith.constant 0 : i32
    %c0_i32_0 = arith.constant 0 : i32
    %c0_i32_1 = arith.constant 0 : i32
    return %arg0, %c0_i32, %c0_i32_0 : i32, i32, i32
  }
}

</mosaic_0001>

<bundles_post_ra>
// kernel: tpu_custom_call.1
= control target key start
LH: loop header
LB: loop body
LE: loop exit
PB: predicated region body
PF: predicated region fallthrough
CT: control target
= control target key end

     0   :  { %s3055_s0 = inlined_call_operand.hbm [shape: f32[8,16,32], index: 0, kind: input, shape index: {}]   ;;  %s3056_s1 = inlined_call_operand.hbm [shape: bf16[32,96], index: 1, kind: input, shape index: {}]   ;;  %s3057_s2 = inlined_call_operand.vmem [shape: f32[1,96], index: 2, kind: input, shape index: {}]   ;;  %s3058_s3 = inlined_call_operand.hbm [shape: bf16[32,32], index: 3, kind: input, shape index: {}]   ;;  %s3059_s4 = inlined_call_operand.vmem [shape: f32[1,32], index: 4, kind: input, shape index: {}]   ;;  %s3060_s5 = inlined_call_operand.hbm [shape: f32[2,16,16], index: 5, kind: input, shape index: {}]   ;;  %s3061_s6 = inlined_call_operand.hbm [shape: f32[4,16,16], index: 6, kind: input, shape index: {}]   ;;  %s3062_s7 = inlined_call_operand.hbm [shape: f32[8,16,32], index: 7, kind: output, shape index: {}]  }
   0x1   :  { %3070 = sst [smem:[#allocation17_spill]] %s3056_s1 }
   0x2   :  { %12 = vsyncpa [#allocation4], 0 }
   0x3   :  { %14 = vsyncpa [#allocation4 + $0x1], 0 }
   0x4   :  { %15 = vsyncpa [#allocation7], 0 }
   0x5   :  { %16 = vsyncpa [#allocation10], 0 }
   0x6   :  { %17 = vsyncpa [#allocation5], 0 }
   0x7   :  { %19 = vsyncpa [#allocation5 + $0x1], 0  ;;  %s2477_s24 = smov 0   ;;  %s2479_s25 = smov 0  }
   0x8   :  { %s2481_s26 = smov 0   ;;  %s2483_s27 = smov 0  }
   0x9 LB: > { %s2498_s28 = sadd.s32 4294967295, %s2417_s27   ;;  %s1788_s29 = sadd.s32 4294967294, %s2417_s27   ;;  %s2417_s27 = sphi %s2483_s27, %s3094_s27   ;;  %s2413_s26 = sphi %s2481_s26, %s3093_s26   ;;  %s2409_s25 = sphi %s2479_s25, %s3092_s25   ;;  %s2405_s24 = sphi %s2477_s24, %s3091_s24  }
   0xa   : > { %p45_p0 = scmp.ne.s32.totalorder %s2409_s25, %s2405_s24  ;;  %p3063_p1 = scmp.eq.s32.totalorder %s2498_s28, 0 }
   0xb   : > { %p201_p3 = scmp.eq.s32.totalorder %s1788_s29, 1  ;;  %p1789_p5 = scmp.ge.s32.totalorder %s2417_s27, 1 }
   0xc   : > { %p2507_p4 = por %p3063_p1, %p45_p0  ;;  %p208_p7 = scmp.lt.s32.totalorder %s2417_s27, 3 }
   0xd   : > { %p2512_p6 = por %p201_p3, %p45_p0  ;;  %s2419_s10 = smov [#allocation6]  }
   0xe   : > { %s3071_s30 = scalar_select %p2507_p4, 1, 0 }
   0xf   : > { %s3072_s8 = scalar_select %p2512_p6, 1, 0 }
  0x10   : > { %p2517_p8 = pnand %p1789_p5, %p208_p7  ;;  %s220_s11 = sshll.u32 %s2419_s10, 4  ;;  %s2521_s11 = int_to_ptr.vmem [resolvable:$true] %s220_s11 }
  0x11   : > { %s2420_s13 = smov [#allocation9]   ;;  %s3075_s1 = sld [smem:[#allocation17_spill]] }
  0x12   : > { %s3073_s9 = scalar_select %p2517_p8, 1, 0 }
  0x13   : > { %p2034_p9 = pneg %p2517_p8  ;;  %s252_s14 = sshll.u32 %s2420_s13, 4  ;;  %s2532_s14 = int_to_ptr.vmem [resolvable:$true] %s252_s14 }
  0x15   : > { %p2528_p11 = pnand %p2034_p9, %p3063_p1 }
  0x17   : > { %s2201_s17 = scalar_lea.hbm %s3075_s1, 256  ;;  %p2542_p13 = pneg %p2528_p11 }
  0x18   : > { %p2202_p12 = scmp.ne.s32.totalorder %s3075_s1, %s2201_s17  ;;  %p2208_p5 = scmp.lt.u32.totalorder %s2201_s17, %s3075_s1 }
  0x1a   : > { %p2204_p0 = pnand %p2542_p13, %p2202_p12 }
  0x1c   : > { %p2205_p3 = pneg %p2204_p0 }
  0x1e   : > { %p2210_p7 = pnand %p2208_p5, %p2205_p3 }
  0x20   : > { %2213 = shalt.err (!%p2210_p7)
}
  0x21   : > { %s2214_s23 = scalar_lea.vmem %s2521_s11, 256  ;;  %p2222_p2 = scmp.lt.s32.totalorder %s2521_s11, %s2521_s11 }
  0x22   : > { %p2215_p9 = scmp.ne.s32.totalorder %s2521_s11, %s2214_s23  ;;  %p2223_p6 = scmp.lt.s32.totalorder %s2214_s23, %s2214_s23 }
  0x24   : > { %p2217_p10 = pnand %p2215_p9, %p2542_p13  ;;  %p2224_p12 = por %p2223_p6, %p2222_p2 }
  0x26   : > { %p2218_p1 = pneg %p2217_p10 }
  0x28   : > { %p2225_p0 = pnand %p2224_p12, %p2218_p1 }
  0x2a   : > { %2228 = shalt.err (!%p2225_p0)
}
  0x2b   : > { %s3064_s29 = smov 64   ;;  %s3065_s10 = smov 4  }
  0x2c   : > { %2037 = dma.hbm_to_vmem [thread:$0]  (!%p2528_p11), %s3075_s1, 256, %s2521_s11, [#allocation7], %s3064_s29, %s3064_s29, %s3065_s10  }
  0x2d   : > { %s2229_s18 = scalar_lea.hbm %s3060_s5, 512 }
  0x2e   : > { %p2230_p1 = scmp.ne.s32.totalorder %s3060_s5, %s2229_s18  ;;  %p2236_p10 = scmp.lt.u32.totalorder %s2229_s18, %s3060_s5 }
  0x30   : > { %p2232_p2 = pnand %p2230_p1, %p2542_p13 }
  0x32   : > { %p2233_p6 = pneg %p2232_p2 }
  0x34   : > { %p2238_p3 = pnand %p2236_p10, %p2233_p6 }
  0x36   : > { %2241 = shalt.err (!%p2238_p3)
}
  0x37   : > { %s2242_s11 = scalar_lea.vmem %s2532_s14, 512  ;;  %p2250_p12 = scmp.lt.s32.totalorder %s2532_s14, %s2532_s14 }
  0x38   : > { %p2243_p5 = scmp.ne.s32.totalorder %s2532_s14, %s2242_s11  ;;  %p2251_p0 = scmp.lt.s32.totalorder %s2242_s11, %s2242_s11 }
  0x3a   : > { %p2245_p7 = pnand %p2243_p5, %p2542_p13  ;;  %p2252_p1 = por %p2251_p0, %p2250_p12 }
  0x3c   : > { %p2246_p9 = pneg %p2245_p7 }
  0x3e   : > { %p2253_p2 = pnand %p2252_p1, %p2246_p9 }
  0x40   : > { %2256 = shalt.err (!%p2253_p2)
}
  0x41   : > { %s3068_s13 = smov 128   ;;  %s2424_s15 = smov 8  }
  0x42   : > { %2043 = dma.hbm_to_vmem [thread:$0]  (!%p2528_p11), %s3060_s5, 512, %s2532_s14, [#allocation10], %s3068_s13, %s3068_s13, %s2424_s15  }
  0x43   : > { %s2425_s18 = smov [#allocation8]   ;;  %s2426_s21 = smov [#allocation11]  }
  0x44   : > { %s236_s19 = sshll.u32 %s2425_s18, 4  ;;  %s265_s22 = sshll.u32 %s2426_s21, 4  ;;  %s237_s19 = int_to_ptr.vmem [resolvable:$true] %s236_s19  ;;  %s2592_s22 = int_to_ptr.vmem [resolvable:$true] %s265_s22 }
  0x45   : > { %s2257_s29 = scalar_lea.hbm %s3058_s3, 256 }
  0x46   : > { %p2258_p6 = scmp.ne.s32.totalorder %s3058_s3, %s2257_s29  ;;  %p2264_p5 = scmp.lt.u32.totalorder %s2257_s29, %s3058_s3 }
  0x48   : > { %p2260_p10 = pnand %p2258_p6, %p2542_p13 }
  0x4a   : > { %p2261_p3 = pneg %p2260_p10 }
  0x4c   : > { %p2266_p7 = pnand %p2264_p5, %p2261_p3 }
  0x4e   : > { %2269 = shalt.err (!%p2266_p7)
}
  0x4f   : > { %s2270_s17 = scalar_lea.vmem %s237_s19, 256  ;;  %p2278_p1 = scmp.lt.s32.totalorder %s237_s19, %s237_s19 }
  0x50   : > { %p2271_p9 = scmp.ne.s32.totalorder %s237_s19, %s2270_s17  ;;  %p2279_p2 = scmp.lt.s32.totalorder %s2270_s17, %s2270_s17 }
  0x52   : > { %p2273_p12 = pnand %p2271_p9, %p2542_p13  ;;  %p2280_p4 = por %p2279_p2, %p2278_p1 }
  0x54   : > { %p2274_p0 = pneg %p2273_p12 }
  0x56   : > { %p2281_p8 = pnand %p2280_p4, %p2274_p0 }
  0x58   : > { %2284 = shalt.err (!%p2281_p8)
}
  0x59   : > { %s3077_s1 = smov 4   ;;  %s3078_s10 = smov 64  }
  0x5a   : > { %2040 = dma.hbm_to_vmem [thread:$0]  (!%p2528_p11), %s3058_s3, 256, %s237_s19, [#allocation7], %s3078_s10, %s3078_s10, %s3077_s1  }
  0x5b   : > { %s2285_s11 = scalar_lea.hbm %s3061_s6, 1024 }
  0x5c   : > { %p2286_p6 = scmp.ne.s32.totalorder %s3061_s6, %s2285_s11  ;;  %p2292_p10 = scmp.lt.u32.totalorder %s2285_s11, %s3061_s6 }
  0x5e   : > { %p2288_p4 = pnand %p2286_p6, %p2542_p13 }
  0x60   : > { %p2289_p8 = pneg %p2288_p4 }
  0x62   : > { %p2294_p3 = pnand %p2292_p10, %p2289_p8 }
  0x64   : > { %2297 = shalt.err (!%p2294_p3)
}
  0x65   : > { %s2298_s19 = scalar_lea.vmem %s2592_s22, 1024  ;;  %p2306_p12 = scmp.lt.s32.totalorder %s2592_s22, %s2592_s22 }
  0x66   : > { %p2299_p5 = scmp.ne.s32.totalorder %s2592_s22, %s2298_s19  ;;  %p2307_p0 = scmp.lt.s32.totalorder %s2298_s19, %s2298_s19 }
  0x68   : > { %p2301_p7 = pnand %p2299_p5, %p2542_p13  ;;  %p2308_p1 = por %p2307_p0, %p2306_p12 }
  0x6a   : > { %p2302_p9 = pneg %p2301_p7 }
  0x6c   : > { %p2309_p2 = pnand %p2308_p1, %p2302_p9 }
  0x6e   : > { %2312 = shalt.err (!%p2309_p2)
}
  0x6f   : > { %s3079_s13 = smov 128   ;;  %s2642_s12 = sadd.s32 1, %s2417_s27  }
  0x70   : > { %2046 = dma.hbm_to_vmem [thread:$0]  (!%p2528_p11), %s3061_s6, 1024, %s2592_s22, [#allocation10], %s3079_s13, %s3079_s13, %s2424_s15  }
  0x71   : > { %s29_s20 = ssub.s32 %s2417_s27, %s2642_s12  ;;  %s32_s18 = sadd.s32 1, %s2413_s26 }
  0x72   : > { %p30_p13 = scmp.eq.s32.totalorder %s29_s20, 0  ;;  %p39_p6 = scmp.ne.s32.totalorder %s2413_s26, %s2409_s25 }
  0x73   : > { %p40_p4 = scmp.eq.s32.totalorder %s2417_s27, 0  ;;  %p3080_p10 = scmp.eq.s32.totalorder %s2498_s28, 1 }
  0x74   : > { %s2651_s29 = scalar_select %p30_p13, %s2413_s26, %s32_s18  }
  0x75   : > { %p41_p8 = por %p40_p4, %p39_p6  ;;  %p2655_p3 = por %p3080_p10, %p39_p6 }
  0x76   : > { %p2059_p5 = scmp.lt.s32.totalorder %s2417_s27, 2  ;;  %s279_s23 = sand.u32 1, %s2413_s26  }
  0x77   : > { %s1795_s11 = sshll.u32 %s279_s23, 6  ;;  %s1843_s22 = sshll.u32 %s2417_s27, 10 }
  0x78   : > { %s2665_s17 = scalar_lea.hbm %s3055_s0, %s1843_s22  ;;  %s283_s19 = scalar_lea.vmem [#allocation3], %s1795_s11 }
  0x79   : > { %s291_s1 = sshll.u32 %s283_s19, 4  ;;  %p2669_p11 = pnand %p2059_p5, %p41_p8  ;;  %s2667_s1 = int_to_ptr.vmem [resolvable:$true] %s291_s1 }
  0x7a   : > { %s2673_s20 = scalar_lea.sflag [#allocation4], %s279_s23  ;;  %s2313_s18 = scalar_lea.hbm %s2665_s17, 1024 }
  0x7b   : > { %p2314_p7 = scmp.ne.s32.totalorder %s2665_s17, %s2313_s18  ;;  %p2315_p9 = pneg %p2669_p11 }
  0x7c   : > { %s2318_s16 = scalar_lea.hbm %s3055_s0, 2048  ;;  %p2319_p1 = scmp.lt.u32.totalorder %s2665_s17, %s3055_s0 }
  0x7d   : > { %p2316_p12 = pnand %p2315_p9, %p2314_p7  ;;  %p2320_p2 = scmp.lt.u32.totalorder %s2318_s16, %s2313_s18 }
  0x7e   : > { %p2322_p6 = scmp.lt.u32.totalorder %s2313_s18, %s2665_s17 }
  0x7f   : > { %p2317_p0 = pneg %p2316_p12  ;;  %p2321_p13 = por %p2320_p2, %p2319_p1 }
  0x81   : > { %p2323_p4 = por %p2322_p6, %p2321_p13 }
  0x83   : > { %p2324_p8 = pnand %p2323_p4, %p2317_p0 }
  0x85   : > { %2327 = shalt.err (!%p2324_p8)
}
  0x86   : > { %s2328_s23 = scalar_lea.vmem %s2667_s1, 1024  ;;  %s2427_s11 = smov [#allocation3]  }
  0x87   : > { %p2329_p10 = scmp.ne.s32.totalorder %s2667_s1, %s2328_s23  ;;  %s2333_s22 = sshll.u32 %s2427_s11, 4  ;;  %s2334_s22 = int_to_ptr.vmem [resolvable:$false] %s2333_s22 }
  0x88   : > { %s2335_s14 = scalar_lea.vmem %s2334_s22, 2048  ;;  %p2336_p12 = scmp.lt.s32.totalorder %s2667_s1, %s2334_s22 }
  0x89   : > { %p2331_p5 = pnand %p2329_p10, %p2315_p9  ;;  %p2337_p1 = scmp.lt.s32.totalorder %s2335_s14, %s2328_s23 }
  0x8b   : > { %p2332_p7 = pneg %p2331_p5  ;;  %p2338_p2 = por %p2337_p1, %p2336_p12 }
  0x8d   : > { %p2339_p13 = pnand %p2338_p2, %p2332_p7 }
  0x8f   : > { %2342 = shalt.err (!%p2339_p13)
}
  0x90   : > { %2050 = dma.hbm_to_vmem [thread:$0]  (!%p2669_p11), %s2665_s17, 1024, %s2667_s1, %s2673_s20, %s3079_s13, %s3079_s13, %s2424_s15  }
  0x91   : > { %p3083_p9 = scmp.ne.s32.totalorder %s3073_s9, 0 }
  0x92   : > { %s2707_s18 = sand.u32 (!%p3083_p9), 1, %s2409_s25   ;;  %p3084_p0 = scmp.ne.s32.totalorder (!%p3083_p9), %s3071_s30, 0 }
  0x93   : > { %303 = sbr.rel (%p3083_p9) target bundleno = 1603 (0x643), region = 48  ;;  %s1800_s16 = sshll.u32 (!%p3083_p9), %s2707_s18, 6 }
  0x94   : > { %s306_s19 = scalar_lea.sflag (!%p3083_p9), [#allocation4], %s2707_s18  ;;  %s309_s10 = scalar_lea.vmem (!%p3083_p9), [#allocation3], %s1800_s16 }
  0x9a   : > { %2388 = dma.done.wait (%p3084_p0), %s306_s19, 1024  }
  0x9b   : > { %2390 = vsyncadd (%p3084_p0), %s306_s19, 4294966272  ;;  %p3085_p11 = scmp.eq.s32.totalorder %s2498_s28, 0 }
  0x9d   : > { %2392 = dma.done.wait (%p3085_p11), [#allocation7], 512   ;;  %p3086_p6 = pmov %p3085_p11 }
  0x9f   : > { %2394 = vsyncadd (%p3086_p6), [#allocation7], 4294966784  ;;  %p3087_p4 = pmov %p3086_p6 }
  0xa1   : > { %2396 = dma.done.wait (%p3087_p4), [#allocation10], 1536   ;;  %p3088_p8 = pmov %p3087_p4 }
  0xa2   : > { %v2133_v0 = vld [vmem:[#allocation6] sm:$0xff]   ;;  %v2134_v1 = vld [vmem:[#allocation6 + $0x8] sm:$0xff]   ;;  %vm394_vm0 = vcmask 261120   ;;  %v361_v7 = vld [vmem:[%s309_s10 + $0x10] sm:$0xff]  ;;  %v2428_v28 = vmov 0.0   ;;  %s2429_s15 = smov 112  }
  0xa3   : > { %2398 = vsyncadd (%p3088_p8), [#allocation10], 4294965760  ;;  %1890 = vmatprep.subr.bf16.mxu0 %v2133_v0  ;;  %2010 = vmatprep.subr.bf16.mxu1 %v2133_v0  ;;  %v359_v2 = vld [vmem:[%s309_s10] sm:$0xff]  ;;  %v360_v3 = vld [vmem:[%s309_s10 + $0x8] sm:$0xff]  ;;  %vm2430_vm1 = vmmov 0   ;;  %s2431_s13 = smov 96  }
  0xa4   : > { %v363_v4 = vld [vmem:[%s309_s10 + $0x20] sm:$0xff]  ;;  %1891 = vmatpush3.bf16.msra.mxu0 %v2133_v0  ;;  %2012 = vmatpush3.bf16.msra.mxu1 %v2133_v0  ;;  %v367_v5 = vpack.c.bf16 %v360_v3, %v359_v2  ;;  %v364_v6 = vld [vmem:[%s309_s10 + $0x28] sm:$0xff]  ;;  %v362_v8 = vld [vmem:[%s309_s10 + $0x18] sm:$0xff]  ;;  %vm515_vm2 = vcmask 130048   ;;  %s2432_s17 = smov 64   ;;  %s2433_s1 = smov 16  }
  0xa5   : > { %1892 = vmatprep.subr.bf16.mxu0 %v2134_v1  ;;  %2011 = vmatprep.subr.bf16.mxu1 %v2134_v1  ;;  %v369_v9 = vpack.c.bf16 %v364_v6, %v363_v4  ;;  %v365_v10 = vld [vmem:[%s309_s10 + $0x30] sm:$0xff]  ;;  %v366_v11 = vld [vmem:[%s309_s10 + $0x38] sm:$0xff]  ;;  %v368_v12 = vpack.c.bf16 %v362_v8, %v361_v7  ;;  %v1806_v15 = vld [vmem:[%s3057_s2] ss:$0 sm:$0xff]  ;;  %vm1545_vm3 = vcmask 261248   ;;  %s355_s11 = scalar_lea.vmem [#allocation12], %s1800_s16 }
  0xa6   : > { %1894 = vmatprep.mubr.msk.bf16.mxu0 %vm394_vm0, %v367_v5  ;;  %v370_v13 = vpack.c.bf16 %v366_v11, %v365_v10  ;;  %v913_v10 = vld [vmem:[#allocation9] sm:$0xff]  ;;  %s1845_s22 = sshll.u32 %s2498_s28, 10  ;;  %s1677_s14 = sshll.u32 %s355_s11, 4  ;;  %s3008_s14 = int_to_ptr.vmem [resolvable:$true] %s1677_s14 }
  0xa7   : > { %1898 = vmatprep.mubr.msk.bf16.mxu1 %vm394_vm0, %v369_v9  ;;  %s3006_s10 = scalar_lea.hbm %s3062_s7, %s1845_s22  ;;  %s1663_s28 = scalar_lea.sflag [#allocation5], %s2707_s18 }
  0xa8   : > { %1893 = vmatpush3.bf16.msra.mxu0 %v2134_v1  ;;  %2013 = vmatpush3.bf16.msra.mxu1 %v2134_v1  ;;  %s2343_s30 = scalar_lea.vmem %s3008_s14, 1024  ;;  %s2434_s9 = smov [#allocation12]  }
  0xa9   : > { %1902 = vmatprep.subr.bf16.mxu1 %v2428_v28  ;;  %1914 = vmatprep.subr.bf16.mxu0 %v2428_v28  ;;  %p2344_p10 = scmp.ne.s32.totalorder %s3008_s14, %s2343_s30 }
  0xab   : > { %1895 = vmatmul.mubr.msk.bf16.vlgmr.msra.gmra.mrb[0].mxu0 %vm394_vm0, %v368_v12  ;;  %1899 = vmatmul.mubr.msk.bf16.vlgmr.msra.gmra.mrb[0].mxu1 %vm394_vm0, %v370_v13  ;;  %v2812_v12 = vld [vmem:[#allocation11] sm:$0xff]  ;;  %p2345_p5 = pnand %p2344_p10, %p2655_p3 }
  0xac   : > { %1904 = vmatprep.mubr.msk.bf16.mxu1 %vm2430_vm1, %v2428_v28  ;;  %1916 = vmatprep.mubr.msk.bf16.mxu0 %vm2430_vm1, %v2428_v28 }
  0xad   : > { %p2346_p7 = pneg %p2345_p5 }
 0x17e   : > { %v1896_v14 = vpop.f32.mrb[0].mxu0  ;;  %v1900_v16 = vpop.f32.mrb[0].mxu1 }
 0x17f   : > { %v466_v17 = vadd.f32 %v1900_v16, %v1806_v15  ;;  %v441_v18 = vpop.f32.mrb[1].mxu0  ;;  %v457_v19 = vpop.f32.mrb[1].mxu1  ;;  %v450_v23 = vadd.f32 %v1896_v14, %v1806_v15 }
 0x180   : > { %v458_v20 = vadd.f32 %v1806_v15, %v457_v19  ;;  %v1897_v21 = vpop.f32.mrb[2].mxu0  ;;  %v1901_v22 = vpop.f32.mrb[2].mxu1  ;;  %v442_v29 = vadd.f32 %v1806_v15, %v441_v18 }
 0x181   : > { %v453_v24 = vadd.f32 %v1897_v21, %v1806_v15  ;;  %v469_v25 = vadd.f32 %v1901_v22, %v1806_v15  ;;  %v444_v26 = vpop.f32.mrb[3].mxu0  ;;  %v460_v27 = vpop.f32.mrb[3].mxu1 }
 0x182   : > { %v445_v30 = vadd.f32 %v1806_v15, %v444_v26  ;;  %v461_v31 = vadd.f32 %v1806_v15, %v460_v27  ;;  %v914_v15 = vld [vmem:[#allocation9 + $0x8] sm:$0xff] }
 0x183   : > { %v2118_v32 = vpack.i.bf16 %v453_v24, %v450_v23  ;;  %v2734_v33 = vpack.c.bf16 %v453_v24, %v450_v23  ;;  %v2128_v34 = vpack.i.bf16 %v469_v25, %v466_v17  ;;  %v2736_v35 = vpack.c.bf16 %v469_v25, %v466_v17  ;;  %v2821_v26 = vld [vmem:[#allocation11 + $0x28] sm:$0xff] }
 0x184   : > { %v504_v36 = vpack.c.bf16 %v445_v30, %v442_v29  ;;  %v506_v37 = vpack.c.bf16 %v461_v31, %v458_v20  ;;  %v2123_v38 = vpack.i.bf16 %v461_v31, %v458_v20  ;;  %v2113_v39 = vpack.i.bf16 %v445_v30, %v442_v29  ;;  %v2817_v20 = vld [vmem:[#allocation11 + $0x20] sm:$0xff]  ;;  %v2823_v27 = vld [vmem:[#allocation11 + $0x8] sm:$0xff] }
 0x186   : > { %2124 = vrot.lane.b32.xlu1 %v2123_v38, %s2429_s15  ;;  %2114 = vrot.lane.b32.xlu0 %v2113_v39, %s2429_s15 }
 0x18a   : > { %2129 = vrot.lane.b32.xlu1 %v2128_v34, %s2429_s15  ;;  %2119 = vrot.lane.b32.xlu0 %v2118_v32, %s2429_s15  ;;  %s2347_s15 = sshll.u32 %s2434_s9, 4  ;;  %s2348_s15 = int_to_ptr.vmem [resolvable:$false] %s2347_s15 }
 0x18b   : > { %p2350_p12 = scmp.lt.s32.totalorder %s3008_s14, %s2348_s15 }
 0x18e   : > { %564 = vrot.lane.b32.xlu1 %v2734_v33, %s2431_s13  ;;  %513 = vrot.lane.b32.xlu0 %v504_v36, %s2431_s13 }
 0x192   : > { %664 = vrot.lane.b32.xlu1 %v2736_v35, %s2431_s13  ;;  %614 = vrot.lane.b32.xlu0 %v506_v37, %s2431_s13 }
 0x1f8   : > { %v2125_v40 = vpop.permute.xlu1 %2124  ;;  %v2115_v41 = vpop.permute.xlu0 %2114 }
 0x1f9   : > { %v2127_v42 = vunpack.i.h.bf16 %v2125_v40  ;;  %v2126_v43 = vunpack.i.l.bf16 %v2125_v40  ;;  %v2117_v44 = vunpack.i.h.bf16 %v2115_v41  ;;  %v2116_v45 = vunpack.i.l.bf16 %v2115_v41 }
 0x1fb   : > { %v508_v46 = vpack.c.bf16 %v2117_v44, %v2116_v45  ;;  %v2748_v49 = vpack.c.bf16 %v2127_v42, %v2126_v43  ;;  %v936_v44 = vld [vmem:[#allocation11 + $0x18] sm:$0xff] }
 0x1fc   : > { %v2130_v47 = vpop.permute.xlu1 %2129  ;;  %v2120_v48 = vpop.permute.xlu0 %2119 }
 0x1fd   : > { %v2122_v50 = vunpack.i.h.bf16 %v2120_v48  ;;  %v2121_v51 = vunpack.i.l.bf16 %v2120_v48  ;;  %714 = vrot.lane.b32.xlu0 %v508_v46, %s2431_s13  ;;  %v2132_v52 = vunpack.i.h.bf16 %v2130_v47  ;;  %v2131_v53 = vunpack.i.l.bf16 %v2130_v47 }
 0x1ff   : > { %v509_v54 = vpack.c.bf16 %v2122_v50, %v2121_v51  ;;  %v2755_v57 = vpack.c.bf16 %v2132_v52, %v2131_v53  ;;  %v939_v50 = vld [vmem:[#allocation11 + $0x30] sm:$0xff] }
 0x200   : > { %v514_v55 = vpop.permute.xlu0 %513  ;;  %v565_v60 = vpop.permute.xlu1 %564 }
 0x201   : > { %v520_v56 = vsel %vm515_vm2, %v514_v55, 0  ;;  %764 = vrot.lane.b32.xlu1 %v509_v54, %s2431_s13  ;;  %814 = vrot.lane.b32.xlu0 %v2748_v49, %s2431_s13  ;;  %v570_v61 = vsel %vm515_vm2, %v565_v60, 0  ;;  %v940_v55 = vld [vmem:[#allocation11 + $0x38] sm:$0xff] }
 0x202   : > { %1903 = vmatpush3.bf16.xpose.msra.mxu1 %v520_v56 }
 0x203   : > { %1908 = vmatprep.subr.bf16.mxu1 %v2428_v28 }
 0x204   : > { %v615_v58 = vpop.permute.xlu0 %614  ;;  %v665_v62 = vpop.permute.xlu1 %664 }
 0x205   : > { %v620_v59 = vsel %vm515_vm2, %v615_v58, 0  ;;  %864 = vrot.lane.b32.xlu1 %v2755_v57, %s2431_s13  ;;  %1172 = vrot.lane.b32.xlu0 %v2734_v33, %s2432_s17  ;;  %v670_v63 = vsel %vm515_vm2, %v665_v62, 0  ;;  %s2349_s13 = scalar_lea.vmem %s2348_s15, 2048 }
 0x206   : > { %1915 = vmatpush3.bf16.xpose.msra.mxu0 %v620_v59  ;;  %p2351_p1 = scmp.lt.s32.totalorder %s2349_s13, %s2343_s30 }
 0x207   : > { %1926 = vmatprep.subr.bf16.mxu0 %v2428_v28 }
 0x208   : > { %p2352_p2 = por %p2351_p1, %p2350_p12 }
 0x209   : > { %1125 = vrot.lane.b32.xlu1 %v504_v36, %s2432_s17  ;;  %1313 = vrot.lane.b32.xlu0 %v508_v46, %s2432_s17 }
 0x20a   : > { %1905 = vmatmul.mubr.msk.bf16.vlgmr.msra.gmra.mrb[4].mxu1 %vm515_vm2, %v504_v36  ;;  %v935_v36 = vld [vmem:[#allocation11 + $0x10] sm:$0xff]  ;;  %p2353_p13 = pnand %p2352_p2, %p2346_p7 }
 0x20b   : > { %1909 = vmatpush3.bf16.xpose.msra.mxu1 %v570_v61  ;;  %1910 = vmatprep.mubr.msk.bf16.mxu1 %vm2430_vm1, %v2428_v28 }
 0x20c   : > { %1920 = vmatprep.subr.bf16.mxu1 %v2428_v28 }
 0x20d   : > { %1219 = vrot.lane.b32.xlu1 %v506_v37, %s2432_s17  ;;  %1917 = vmatmul.mubr.msk.bf16.vlgmr.msra.gmra.mrb[4].mxu0 %vm515_vm2, %v506_v37 }
 0x20e   : > { %1928 = vmatprep.mubr.msk.bf16.mxu0 %vm2430_vm1, %v2428_v28 }
 0x211   : > { %1266 = vrot.lane.b32.xlu1 %v2736_v35, %s2432_s17 }
 0x212   : > { %1911 = vmatmul.mubr.msk.bf16.vlgmr.msra.gmra.mrb[8].mxu1 %vm515_vm2, %v2734_v33 }
 0x213   : > { %1921 = vmatpush3.bf16.xpose.msra.mxu1 %v670_v63  ;;  %1922 = vmatprep.mubr.msk.bf16.mxu1 %vm2430_vm1, %v2428_v28 }
 0x214   : > { %1932 = vmatprep.subr.bf16.mxu1 %v2428_v28 }
 0x215   : > { %1360 = vrot.lane.b32.xlu1 %v509_v54, %s2432_s17 }
 0x21a   : > { %1923 = vmatmul.mubr.msk.bf16.vlgmr.msra.gmra.mrb[12].mxu1 %vm515_vm2, %v2736_v35 }
 0x21b   : > { %1934 = vmatprep.mubr.msk.bf16.mxu1 %vm2430_vm1, %v2428_v28 }
 0x26f   : > { %v715_v0 = vpop.permute.xlu0 %714 }
 0x270   : > { %v720_v1 = vsel %vm515_vm2, %v715_v0, 0 }
 0x271   : > { %1927 = vmatpush3.bf16.xpose.msra.mxu0 %v720_v1  ;;  %v915_v1 = vld [vmem:[#allocation9 + $0x10] sm:$0xff] }
 0x272   : > { %1938 = vmatprep.subr.bf16.mxu0 %v2428_v28 }
 0x273   : > { %v765_v2 = vpop.permute.xlu1 %764  ;;  %v815_v4 = vpop.permute.xlu0 %814 }
 0x274   : > { %v770_v3 = vsel %vm515_vm2, %v765_v2, 0  ;;  %v820_v5 = vsel %vm515_vm2, %v815_v4, 0  ;;  %v916_v4 = vld [vmem:[#allocation9 + $0x18] sm:$0xff] }
 0x275   : > { %1933 = vmatpush3.bf16.xpose.msra.mxu1 %v770_v3 }
 0x276   : > { %1944 = vmatprep.subr.bf16.mxu1 %v2428_v28 }
 0x277   : > { %v865_v6 = vpop.permute.xlu1 %864  ;;  %v1173_v9 = vpop.permute.xlu0 %1172 }
 0x278   : > { %1929 = vmatmul.mubr.msk.bf16.vlgmr.msra.gmra.mrb[8].mxu0 %vm515_vm2, %v508_v46  ;;  %v870_v7 = vsel %vm515_vm2, %v865_v6, 0 }
 0x279   : > { %1939 = vmatpush3.bf16.xpose.msra.mxu0 %v820_v5  ;;  %1940 = vmatprep.mubr.msk.bf16.mxu0 %vm2430_vm1, %v2428_v28 }
 0x27a   : > { %1950 = vmatprep.subr.bf16.mxu0 %v2428_v28 }
 0x27b   : > { %v1126_v8 = vpop.permute.xlu1 %1125 }
 0x27c   : > { %1935 = vmatmul.mubr.msk.bf16.vlgmr.msra.gmra.mrb[16].mxu1 %vm515_vm2, %v509_v54 }
 0x27d   : > { %1945 = vmatpush3.bf16.xpose.msra.mxu1 %v870_v7  ;;  %1946 = vmatprep.mubr.msk.bf16.mxu1 %vm2430_vm1, %v2428_v28 }
 0x27e   : > { %1956 = vmatprep.subr.bf16.mxu1 %v2428_v28 }
 0x280   : > { %1941 = vmatmul.mubr.msk.bf16.vlgmr.msra.gmra.mrb[12].mxu0 %vm515_vm2, %v2748_v49 }
 0x281   : > { %1951 = vmatpush3.bf16.msra.mxu0 %v1126_v8  ;;  %1952 = vmatprep.mubr.msk.bf16.mxu0 %vm2430_vm1, %v2428_v28 }
 0x282   : > { %1962 = vmatprep.subr.bf16.mxu0 %v2428_v28 }
 0x284   : > { %1947 = vmatmul.mubr.msk.bf16.vlgmr.msra.gmra.mrb[20].mxu1 %vm515_vm2, %v2755_v57 }
 0x285   : > { %1957 = vmatpush3.bf16.msra.mxu1 %v1173_v9  ;;  %1958 = vmatprep.mubr.msk.bf16.mxu1 %vm2430_vm1, %v2428_v28 }
 0x286   : > { %1968 = vmatprep.subr.bf16.mxu1 %v2428_v28 }
 0x2dd   : > { %v556_v11 = vpop.f32.mrb[4].mxu1 }
 0x2de   : > { %v917_v13 = vadd.f32 %v913_v10, %v556_v11  ;;  %v1906_v14 = vpop.f32.mrb[5].mxu1 }
 0x2df   : > { %v559_v16 = vpop.f32.mrb[6].mxu1 }
 0x2e0   : > { %v1907_v17 = vpop.f32.mrb[7].mxu1  ;;  %v656_v18 = vpop.f32.mrb[4].mxu0  ;;  %v2815_v19 = vadd.f32 %v2812_v12, %v917_v13  ;;  %v918_v21 = vadd.f32 %v914_v15, %v559_v16 }
 0x2e1   : > { %v921_v22 = vadd.f32 %v913_v10, %v656_v18  ;;  %v1918_v23 = vpop.f32.mrb[5].mxu0 }
 0x2e2   : > { %v957_v24 = vsel %vm515_vm2, %v2815_v19, -inf  ;;  %v659_v25 = vpop.f32.mrb[6].mxu0  ;;  %v2834_v35 = vadd.f32 %v2823_v27, %v918_v21 }
 0x2e3   : > { %958 = vmax.xlane.f32.xlu0 %v957_v24  ;;  %v922_v29 = vadd.f32 %v914_v15, %v659_v25  ;;  %v1919_v30 = vpop.f32.mrb[7].mxu0  ;;  %v2826_v31 = vadd.f32 %v2817_v20, %v921_v22 }
 0x2e4   : > { %v960_v45 = vsel %vm515_vm2, %v2834_v35, -inf }
 0x2e5   : > { %v606_v32 = vpop.f32.mrb[8].mxu1  ;;  %v969_v33 = vsel %vm515_vm2, %v2826_v31, -inf  ;;  %v2831_v34 = vadd.f32 %v2821_v26, %v922_v29 }
 0x2e6   : > { %v919_v37 = vadd.f32 %v913_v10, %v606_v32  ;;  %v1912_v38 = vpop.f32.mrb[9].mxu1  ;;  %970 = vmax.xlane.f32.xlu1 %v969_v33 }
 0x2e7   : > { %v609_v39 = vpop.f32.mrb[10].mxu1  ;;  %v972_v40 = vsel %vm515_vm2, %v2831_v34, -inf }
 0x2e8   : > { %v920_v41 = vadd.f32 %v914_v15, %v609_v39  ;;  %v1913_v42 = vpop.f32.mrb[11].mxu1  ;;  %973 = vmax.xlane.f32.xlu0 %v972_v40  ;;  %v2838_v43 = vadd.f32 %v935_v36, %v919_v37 }
 0x2ea   : > { %961 = vmax.xlane.f32.xlu1 %v960_v45  ;;  %v963_v46 = vsel %vm515_vm2, %v2838_v43, -inf  ;;  %v2844_v47 = vadd.f32 %v936_v44, %v920_v41 }
 0x2ec   : > { %964 = vmax.xlane.f32.xlu0 %v963_v46  ;;  %v966_v54 = vsel %vm515_vm2, %v2844_v47, -inf }
 0x2ed   : > { %v706_v48 = vpop.f32.mrb[12].mxu1 }
 0x2ee   : > { %v923_v51 = vadd.f32 %v913_v10, %v706_v48  ;;  %v1924_v52 = vpop.f32.mrb[13].mxu1 }
 0x2ef   : > { %v709_v53 = vpop.f32.mrb[14].mxu1 }
 0x2f0   : > { %v924_v56 = vadd.f32 %v914_v15, %v709_v53  ;;  %v1925_v58 = vpop.f32.mrb[15].mxu1  ;;  %967 = vmax.xlane.f32.xlu0 %v966_v54  ;;  %v2848_v59 = vadd.f32 %v939_v50, %v923_v51  ;;  %v1220_v51 = vpop.permute.xlu1 %1219 }
 0x2f2   : > { %v975_v60 = vsel %vm515_vm2, %v2848_v59, -inf  ;;  %v2852_v61 = vadd.f32 %v940_v55, %v924_v56 }
 0x2f3   : > { %976 = vmax.xlane.f32.xlu1 %v975_v60 }
 0x2f4   : > { %v978_v62 = vsel %vm515_vm2, %v2852_v61, -inf  ;;  %v1267_v52 = vpop.permute.xlu1 %1266 }
 0x2f5   : > { %979 = vmax.xlane.f32.xlu0 %v978_v62 }
 0x2f8   : > { %v1361_v53 = vpop.permute.xlu1 %1360 }
 0x34b   : > { %v756_v63 = vpop.f32.mrb[8].mxu0 }
 0x34c   : > { %v1930_v0 = vpop.f32.mrb[9].mxu0  ;;  %v925_v6 = vadd.f32 %v915_v1, %v756_v63 }
 0x34d   : > { %v759_v2 = vpop.f32.mrb[10].mxu0 }
 0x34e   : > { %v1931_v3 = vpop.f32.mrb[11].mxu0  ;;  %v926_v10 = vadd.f32 %v916_v4, %v759_v2  ;;  %v2863_v21 = vadd.f32 %v2812_v12, %v925_v6 }
 0x34f   : > { %v806_v5 = vpop.f32.mrb[16].mxu1 }
 0x350   : > { %v927_v7 = vadd.f32 %v915_v1, %v806_v5  ;;  %v1936_v8 = vpop.f32.mrb[17].mxu1  ;;  %v2868_v25 = vadd.f32 %v2823_v27, %v926_v10 }
 0x351   : > { %v809_v9 = vpop.f32.mrb[18].mxu1 }
 0x352   : > { %v928_v11 = vadd.f32 %v916_v4, %v809_v9  ;;  %v1937_v13 = vpop.f32.mrb[19].mxu1  ;;  %v2856_v14 = vadd.f32 %v935_v36, %v927_v7  ;;  %v981_v36 = vsel %vm515_vm2, %v2863_v21, -inf  ;;  %v984_v40 = vsel %vm515_vm2, %v2868_v25, -inf }
 0x353   : > { %v856_v15 = vpop.f32.mrb[12].mxu0 }
 0x354   : > { %v1942_v16 = vpop.f32.mrb[13].mxu0  ;;  %v987_v17 = vsel %vm515_vm2, %v2856_v14, -inf  ;;  %v2860_v18 = vadd.f32 %v936_v44, %v928_v11  ;;  %v929_v30 = vadd.f32 %v915_v1, %v856_v15 }
 0x355   : > { %988 = vmax.xlane.f32.xlu1 %v987_v17  ;;  %v859_v22 = vpop.f32.mrb[14].mxu0 }
 0x356   : > { %v1943_v23 = vpop.f32.mrb[15].mxu0  ;;  %v990_v24 = vsel %vm515_vm2, %v2860_v18, -inf  ;;  %v930_v12 = vadd.f32 %v916_v4, %v859_v22  ;;  %v2881_v44 = vadd.f32 %v2817_v20, %v929_v30  ;;  %v1314_v20 = vpop.permute.xlu0 %1313 }
 0x357   : > { %v906_v29 = vpop.f32.mrb[20].mxu1  ;;  %991 = vmax.xlane.f32.xlu0 %v990_v24 }
 0x358   : > { %v931_v32 = vadd.f32 %v915_v1, %v906_v29  ;;  %v1948_v33 = vpop.f32.mrb[21].mxu1  ;;  %v2886_v46 = vadd.f32 %v2821_v26, %v930_v12  ;;  %v993_v48 = vsel %vm515_vm2, %v2881_v44, -inf }
 0x359   : > { %v909_v37 = vpop.f32.mrb[22].mxu1  ;;  %982 = vmax.xlane.f32.xlu1 %v981_v36 }
 0x35a   : > { %v932_v38 = vadd.f32 %v916_v4, %v909_v37  ;;  %v1949_v39 = vpop.f32.mrb[23].mxu1  ;;  %v2874_v41 = vadd.f32 %v939_v50, %v931_v32  ;;  %v996_v50 = vsel %vm515_vm2, %v2886_v46, -inf }
 0x35b   : > { %985 = vmax.xlane.f32.xlu0 %v984_v40 }
 0x35c   : > { %v999_v27 = vsel %vm515_vm2, %v2874_v41, -inf  ;;  %v2878_v42 = vadd.f32 %v940_v55, %v932_v38 }
 0x35d   : > { %1000 = vmax.xlane.f32.xlu1 %v999_v27 }
 0x35e   : > { %v1002_v45 = vsel %vm515_vm2, %v2878_v42, -inf }
 0x35f   : > { %1003 = vmax.xlane.f32.xlu0 %v1002_v45 }
 0x361   : > { %994 = vmax.xlane.f32.xlu1 %v993_v48 }
 0x363   : > { %997 = vmax.xlane.f32.xlu0 %v996_v50 }
 0x370   : > { %v959_v54 = vpop.xlane.xlu0 %958 }
 0x371   : > { %v1005_v26 = vsub.f32 %v2815_v19, %v959_v54 }
 0x372   : > { %1454 = vrot.lane.b32.xlu1 %v2755_v57, %s2432_s17 }
 0x373   : > { %v971_v55 = vpop.xlane.xlu1 %970  ;;  %v1021_v58 = vmul.f32 1.442695, %v1005_v26 }
 0x374   : > { %v1009_v57 = vsub.f32 %v2826_v31, %v971_v55 }
 0x375   : > { %v974_v56 = vpop.xlane.xlu0 %973  ;;  %2137 = vpow2.f32 %v1021_v58 }
 0x376   : > { %v1010_v62 = vsub.f32 %v2831_v34, %v974_v56  ;;  %v1029_v6 = vmul.f32 1.442695, %v1009_v57 }
 0x377   : > { %v962_v60 = vpop.xlane.xlu1 %961 }
 0x378   : > { %v1006_v63 = vsub.f32 %v2834_v35, %v962_v60  ;;  %v1031_v3 = vmul.f32 1.442695, %v1010_v62 }
 0x379   : > { %1407 = vrot.lane.b32.xlu0 %v2748_v49, %s2432_s17  ;;  %v965_v0 = vpop.xlane.xlu0 %964 }
 0x37a   : > { %v1023_v1 = vmul.f32 1.442695, %v1006_v63  ;;  %v1007_v2 = vsub.f32 %v2838_v43, %v965_v0 }
 0x37c   : > { %2139 = vpow2.f32 %v1023_v1  ;;  %v1025_v19 = vmul.f32 1.442695, %v1007_v2 }
 0x37d   : > { %v968_v4 = vpop.xlane.xlu0 %967  ;;  %2141 = vpow2.f32 %v1031_v3 }
 0x37e   : > { %v1008_v5 = vsub.f32 %v2844_v47, %v968_v4  ;;  %2143 = vpow2.f32 %v1025_v19 }
 0x37f   : > { %v2904_v8 = vpop.eup %2137 }
 0x380   : > { %v1027_v34 = vmul.f32 1.442695, %v1008_v5  ;;  %v977_v35 = vpop.xlane.xlu1 %976 }
 0x381   : > { %v1011_v49 = vsub.f32 %v2848_v59, %v977_v35 }
 0x382   : > { %2145 = vpow2.f32 %v1027_v34  ;;  %v980_v7 = vpop.xlane.xlu0 %979 }
 0x383   : > { %v1012_v43 = vsub.f32 %v2852_v61, %v980_v7  ;;  %2147 = vpow2.f32 %v1029_v6  ;;  %v1033_v10 = vmul.f32 1.442695, %v1011_v49 }
 0x385   : > { %v1035_v31 = vmul.f32 1.442695, %v1012_v43 }
 0x386   : > { %v2906_v9 = vpop.eup %2139 }
 0x387   : > { %v1117_v47 = vpack.c.bf16 %v2906_v9, %v2904_v8  ;;  %2149 = vpow2.f32 %v1035_v31  ;;  %v2911_v11 = vpop.eup %2141  ;;  %v1056_v7 = vsel %vm515_vm2, %v2906_v9, 0.0 }
 0x388   : > { %2151 = vpow2.f32 %v1033_v10  ;;  %v2915_v59 = vpop.eup %2143  ;;  %v1068_v10 = vsel %vm515_vm2, %v2911_v11, 0.0 }
 0x389   : > { %1953 = vmatmul.mubr.msk.bf16.vlgmr.msra.gmra.mrb[16].mxu0 %vm515_vm2, %v1117_v47  ;;  %v1059_v49 = vsel %vm515_vm2, %v2915_v59, 0.0 }
 0x38a   : > { %1963 = vmatpush3.bf16.msra.mxu0 %v1220_v51  ;;  %1964 = vmatprep.mubr.msk.bf16.mxu0 %vm2430_vm1, %v2428_v28 }
 0x38b   : > { %1974 = vmatprep.subr.bf16.mxu0 %v2428_v28 }
 0x38c   : > { %v2918_v61 = vpop.eup %2145 }
 0x38d   : > { %v1118_v13 = vpack.c.bf16 %v2918_v61, %v2915_v59  ;;  %v2922_v15 = vpop.eup %2147  ;;  %v1062_v31 = vsel %vm515_vm2, %v2918_v61, 0.0 }
 0x38e   : > { %v1119_v16 = vpack.c.bf16 %v2911_v11, %v2922_v15  ;;  %v1065_v43 = vsel %vm515_vm2, %v2922_v15, 0.0 }
 0x38f   : > { %1959 = vmatmul.mubr.msk.bf16.vlgmr.msra.gmra.mrb[24].mxu1 %vm515_vm2, %v1118_v13 }
 0x390   : > { %1969 = vmatpush3.bf16.msra.mxu1 %v1267_v52  ;;  %1970 = vmatprep.mubr.msk.bf16.mxu1 %vm2430_vm1, %v2428_v28 }
 0x391   : > { %1965 = vmatmul.mubr.msk.bf16.vlgmr.msra.gmra.mrb[20].mxu0 %vm515_vm2, %v1119_v16  ;;  %1980 = vmatprep.subr.bf16.mxu1 %v2428_v28  ;;  %v2931_v17 = vpop.eup %2149 }
 0x392   : > { %1975 = vmatpush3.bf16.msra.mxu0 %v1314_v20  ;;  %1976 = vmatprep.mubr.msk.bf16.mxu0 %vm2430_vm1, %v2428_v28  ;;  %v2936_v22 = vpop.eup %2151  ;;  %v1074_v9 = vsel %vm515_vm2, %v2931_v17, 0.0 }
 0x393   : > { %1986 = vmatprep.subr.bf16.mxu0 %v2428_v28  ;;  %v1120_v23 = vpack.c.bf16 %v2931_v17, %v2936_v22 }
 0x397   : > { %1971 = vmatmul.mubr.msk.bf16.vlgmr.msra.gmra.mrb[28].mxu1 %vm515_vm2, %v1120_v23 }
 0x398   : > { %1981 = vmatpush3.bf16.msra.mxu1 %v1361_v53  ;;  %1982 = vmatprep.mubr.msk.bf16.mxu1 %vm2430_vm1, %v2428_v28 }
 0x399   : > { %1992 = vmatprep.subr.bf16.mxu1 %v2428_v28 }
 0x3e2   : > { %v989_v24 = vpop.xlane.xlu1 %988 }
 0x3e3   : > { %v1015_v29 = vsub.f32 %v2856_v14, %v989_v24 }
 0x3e4   : > { %v992_v30 = vpop.xlane.xlu0 %991 }
 0x3e5   : > { %v1041_v32 = vmul.f32 1.442695, %v1015_v29  ;;  %v1016_v33 = vsub.f32 %v2860_v18, %v992_v30 }
 0x3e6   : > { %v983_v36 = vpop.xlane.xlu1 %982 }
 0x3e7   : > { %v1043_v37 = vmul.f32 1.442695, %v1016_v33  ;;  %v1013_v12 = vsub.f32 %v2863_v21, %v983_v36  ;;  %2153 = vpow2.f32 %v1041_v32 }
 0x3e8   : > { %v986_v38 = vpop.xlane.xlu0 %985 }
 0x3e9   : > { %2155 = vpow2.f32 %v1043_v37  ;;  %v1037_v39 = vmul.f32 1.442695, %v1013_v12  ;;  %v1014_v40 = vsub.f32 %v2868_v25, %v986_v38 }
 0x3ea   : > { %v1001_v27 = vpop.xlane.xlu1 %1000 }
 0x3eb   : > { %2157 = vpow2.f32 %v1037_v39  ;;  %v1039_v45 = vmul.f32 1.442695, %v1014_v40  ;;  %v1019_v48 = vsub.f32 %v2874_v41, %v1001_v27 }
 0x3ec   : > { %v1004_v14 = vpop.xlane.xlu0 %1003 }
 0x3ed   : > { %2159 = vpow2.f32 %v1039_v45  ;;  %v1049_v50 = vmul.f32 1.442695, %v1019_v48  ;;  %v1020_v18 = vsub.f32 %v2878_v42, %v1004_v14 }
 0x3ee   : > { %v995_v51 = vpop.xlane.xlu1 %994 }
 0x3ef   : > { %v1051_v52 = vmul.f32 1.442695, %v1020_v18  ;;  %v1017_v21 = vsub.f32 %v2881_v44, %v995_v51  ;;  %2161 = vpow2.f32 %v1049_v50 }
 0x3f0   : > { %v998_v20 = vpop.xlane.xlu0 %997 }
 0x3f1   : > { %2163 = vpow2.f32 %v1051_v52  ;;  %v1045_v53 = vmul.f32 1.442695, %v1017_v21  ;;  %v1018_v25 = vsub.f32 %v2886_v46, %v998_v20  ;;  %v2154_v54 = vpop.eup %2153 }
 0x3f2   : > { %v1455_v58 = vpop.permute.xlu1 %1454  ;;  %v1083_v0 = vsel %vm515_vm2, %v2154_v54, 0.0 }
 0x3f3   : > { %v2156_v26 = vpop.eup %2155  ;;  %2165 = vpow2.f32 %v1045_v53  ;;  %v1047_v55 = vmul.f32 1.442695, %v1018_v25 }
 0x3f4   : > { %v1122_v41 = vpack.c.bf16 %v2156_v26, %v2154_v54  ;;  %v1408_v63 = vpop.permute.xlu0 %1407  ;;  %v1086_v3 = vsel %vm515_vm2, %v2156_v26, 0.0 }
 0x3f5   : > { %v2158_v56 = vpop.eup %2157  ;;  %2167 = vpow2.f32 %v1047_v55 }
 0x3f6   : > { %1983 = vmatmul.mubr.msk.bf16.vlgmr.msra.gmra.mrb[32].mxu1 %vm515_vm2, %v1122_v41  ;;  %v1077_v42 = vsel %vm515_vm2, %v2158_v56, 0.0 }
 0x3f7   : > { %v2160_v60 = vpop.eup %2159  ;;  %1993 = vmatpush3.bf16.msra.mxu1 %v1455_v58  ;;  %1078 = vadd.xlane.f32.xlu0 %v1077_v42 }
 0x3f8   : > { %v1080_v44 = vsel %vm515_vm2, %v2160_v60, 0.0  ;;  %v1121_v62 = vpack.c.bf16 %v2160_v60, %v2158_v56  ;;  %1994 = vmatprep.mubr.msk.bf16.mxu1 %vm2430_vm1, %v2428_v28 }
 0x3f9   : > { %1081 = vadd.xlane.f32.xlu1 %v1080_v44  ;;  %v2162_v46 = vpop.eup %2161 }
 0x3fa   : > { %1977 = vmatmul.mubr.msk.bf16.vlgmr.msra.gmra.mrb[24].mxu0 %vm515_vm2, %v1121_v62  ;;  %v1095_v6 = vsel %vm515_vm2, %v2162_v46, 0.0 }
 0x3fb   : > { %v2164_v1 = vpop.eup %2163  ;;  %1987 = vmatpush3.bf16.msra.mxu0 %v1408_v63  ;;  %1084 = vadd.xlane.f32.xlu0 %v1083_v0 }
 0x3fc   : > { %v1124_v2 = vpack.c.bf16 %v2164_v1, %v2162_v46  ;;  %1988 = vmatprep.mubr.msk.bf16.mxu0 %vm2430_vm1, %v2428_v28  ;;  %v1053_v28 = vsel %vm515_vm2, %v2904_v8, 0.0  ;;  %v1098_v35 = vsel %vm515_vm2, %v2164_v1, 0.0  ;;  %v1071_v8 = vsel %vm515_vm2, %v2936_v22, 0.0 }
 0x3fd   : > { %v2166_v57 = vpop.eup %2165 }
 0x3fe   : > { %1995 = vmatmul.mubr.msk.bf16.vlgmr.msra.gmra.mrb[36].mxu1 %vm515_vm2, %v1124_v2  ;;  %v1089_v19 = vsel %vm515_vm2, %v2166_v57, 0.0 }
 0x3ff   : > { %v2168_v4 = vpop.eup %2167  ;;  %1087 = vadd.xlane.f32.xlu0 %v1086_v3  ;;  %1090 = vadd.xlane.f32.xlu1 %v1089_v19 }
 0x400   : > { %v1123_v5 = vpack.c.bf16 %v2168_v4, %v2166_v57  ;;  %v1092_v34 = vsel %vm515_vm2, %v2168_v4, 0.0 }
 0x402   : > { %1989 = vmatmul.mubr.msk.bf16.vlgmr.msra.gmra.mrb[28].mxu0 %vm515_vm2, %v1123_v5  ;;  %v2135_v5 = vld [vmem:[#allocation8] sm:$0xff]  }
 0x403   : > { %1096 = vadd.xlane.f32.xlu1 %v1095_v6  ;;  %1093 = vadd.xlane.f32.xlu0 %v1092_v34  ;;  %v2136_v6 = vld [vmem:[#allocation8 + $0x8] sm:$0xff]  }
 0x404   : > { %1998 = vmatprep.subr.bf16.mxu0 %v2135_v5 }
 0x405   : > { %1999 = vmatpush3.bf16.msra.mxu0 %v2135_v5 }
 0x406   : > { %2000 = vmatprep.subr.bf16.mxu0 %v2136_v6 }
 0x407   : > { %1054 = vadd.xlane.f32.xlu1 %v1053_v28  ;;  %1099 = vadd.xlane.f32.xlu0 %v1098_v35 }
 0x409   : > { %2001 = vmatpush3.bf16.msra.mxu0 %v2136_v6 }
 0x40b   : > { %1060 = vadd.xlane.f32.xlu1 %v1059_v49  ;;  %1057 = vadd.xlane.f32.xlu0 %v1056_v7 }
 0x40f   : > { %1066 = vadd.xlane.f32.xlu1 %v1065_v43  ;;  %1063 = vadd.xlane.f32.xlu0 %v1062_v31 }
 0x413   : > { %1072 = vadd.xlane.f32.xlu1 %v1071_v8  ;;  %1069 = vadd.xlane.f32.xlu0 %v1068_v10 }
 0x417   : > { %1075 = vadd.xlane.f32.xlu0 %v1074_v9 }
 0x45c   : > { %v1165_v47 = vpop.f32.mrb[16].mxu0 }
 0x45d   : > { %v1954_v59 = vpop.f32.mrb[17].mxu0 }
 0x45e   : > { %v1168_v13 = vpop.f32.mrb[18].mxu0 }
 0x45f   : > { %v1955_v15 = vpop.f32.mrb[19].mxu0 }
 0x462   : > { %v1212_v16 = vpop.f32.mrb[24].mxu1 }
 0x463   : > { %v1960_v61 = vpop.f32.mrb[25].mxu1 }
 0x464   : > { %v1215_v23 = vpop.f32.mrb[26].mxu1  ;;  %v1259_v24 = vpop.f32.mrb[20].mxu0 }
 0x465   : > { %v1961_v29 = vpop.f32.mrb[27].mxu1  ;;  %v1966_v30 = vpop.f32.mrb[21].mxu0 }
 0x466   : > { %v1262_v22 = vpop.f32.mrb[22].mxu0 }
 0x467   : > { %v1967_v32 = vpop.f32.mrb[23].mxu0 }
 0x46a   : > { %v1306_v33 = vpop.f32.mrb[28].mxu1 }
 0x46b   : > { %v1972_v11 = vpop.f32.mrb[29].mxu1 }
 0x46c   : > { %v1309_v36 = vpop.f32.mrb[30].mxu1 }
 0x46d   : > { %v1973_v37 = vpop.f32.mrb[31].mxu1 }
 0x484   : > { %v1079_v12 = vpop.xlane.xlu0 %1078 }
 0x486   : > { %v1082_v38 = vpop.xlane.xlu1 %1081 }
 0x488   : > { %v1085_v17 = vpop.xlane.xlu0 %1084 }
 0x48c   : > { %v1091_v39 = vpop.xlane.xlu1 %1090  ;;  %v1088_v40 = vpop.xlane.xlu0 %1087 }
 0x490   : > { %v1097_v27 = vpop.xlane.xlu1 %1096  ;;  %v1094_v45 = vpop.xlane.xlu0 %1093 }
 0x494   : > { %v1055_v48 = vpop.xlane.xlu1 %1054  ;;  %v1100_v14 = vpop.xlane.xlu0 %1099 }
 0x495   : > { %2169 = vrcp.f32 %v1055_v48 }
 0x498   : > { %v1061_v50 = vpop.xlane.xlu1 %1060  ;;  %v1058_v18 = vpop.xlane.xlu0 %1057 }
 0x499   : > { %2171 = vrcp.f32 %v1058_v18 }
 0x49a   : > { %2173 = vrcp.f32 %v1061_v50 }
 0x49c   : > { %v1067_v51 = vpop.xlane.xlu1 %1066  ;;  %v1064_v52 = vpop.xlane.xlu0 %1063 }
 0x49d   : > { %2175 = vrcp.f32 %v1064_v52 }
 0x49e   : > { %2177 = vrcp.f32 %v1067_v51 }
 0x49f   : > { %v2170_v53 = vpop.eup %2169 }
 0x4a0   : > { %v1073_v21 = vpop.xlane.xlu1 %1072  ;;  %v1070_v20 = vpop.xlane.xlu0 %1069  ;;  %v1501_v26 = vmul.f32 %v2170_v53, %v1165_v47 }
 0x4a1   : > { %2179 = vrcp.f32 %v1070_v20 }
 0x4a2   : > { %2181 = vrcp.f32 %v1073_v21 }
 0x4a3   : > { %v2172_v25 = vpop.eup %2171 }
 0x4a4   : > { %v1076_v54 = vpop.xlane.xlu0 %1075  ;;  %v1502_v55 = vmul.f32 %v2172_v25, %v1168_v13  ;;  %v2174_v41 = vpop.eup %2173 }
 0x4a5   : > { %2183 = vrcp.f32 %v1076_v54  ;;  %v1503_v42 = vmul.f32 %v2174_v41, %v1212_v16 }
 0x4a6   : > { %v1517_v56 = vpack.c.bf16 %v1502_v55, %v1501_v26  ;;  %2185 = vrcp.f32 %v1085_v17  ;;  %v1829_v26 = vld [vmem:[%s3059_s4] ss:$0 sm:$0xff] }
 0x4a7   : > { %v2176_v58 = vpop.eup %2175  ;;  %2187 = vrcp.f32 %v1088_v40 }
 0x4a8   : > { %v1504_v60 = vmul.f32 %v2176_v58, %v1215_v23  ;;  %1521 = vst.msk [vmem:[#allocation2] sm:$0xff] %vm515_vm2, %v1517_v56  ;;  %v2178_v44 = vpop.eup %2177  ;;  %2189 = vrcp.f32 %v1079_v12 }
 0x4a9   : > { %v1505_v0 = vmul.f32 %v2178_v44, %v1259_v24  ;;  %2191 = vrcp.f32 %v1082_v38 }
 0x4aa   : > { %v1518_v62 = vpack.c.bf16 %v1504_v60, %v1503_v42  ;;  %2193 = vrcp.f32 %v1097_v27 }
 0x4ab   : > { %v2180_v46 = vpop.eup %2179  ;;  %2195 = vrcp.f32 %v1100_v14 }
 0x4ac   : > { %v2182_v63 = vpop.eup %2181  ;;  %v1506_v1 = vmul.f32 %v2180_v46, %v1262_v22  ;;  %1522 = vst.msk [vmem:[#allocation2 + $0x8] sm:$0xff] %vm515_vm2, %v1518_v62  ;;  %2197 = vrcp.f32 %v1091_v39 }
 0x4ad   : > { %v1507_v3 = vmul.f32 %v2182_v63, %v1306_v33  ;;  %2199 = vrcp.f32 %v1094_v45 }
 0x4ae   : > { %v1519_v57 = vpack.c.bf16 %v1506_v1, %v1505_v0 }
 0x4af   : > { %v2184_v2 = vpop.eup %2183 }
 0x4b0   : > { %v1508_v19 = vmul.f32 %v2184_v2, %v1309_v36  ;;  %1523 = vst.msk [vmem:[#allocation2 + $0x10] sm:$0xff] %vm515_vm2, %v1519_v57  ;;  %v2186_v28 = vpop.eup %2185 }
 0x4b1   : > { %v2188_v49 = vpop.eup %2187 }
 0x4b2   : > { %v1520_v4 = vpack.c.bf16 %v1508_v19, %v1507_v3  ;;  %v2190_v10 = vpop.eup %2189 }
 0x4b3   : > { %v2192_v15 = vpop.eup %2191 }
 0x4b4   : > { %1524 = vst.msk [vmem:[#allocation2 + $0x18] sm:$0xff] %vm515_vm2, %v1520_v4  ;;  %v2194_v29 = vpop.eup %2193 }
 0x4b5   : > { %v2196_v32 = vpop.eup %2195 }
 0x4b6   : > { %v2198_v38 = vpop.eup %2197 }
 0x4b7   : > { %v2200_v40 = vpop.eup %2199 }
 0x4c9   : > { %v1400_v34 = vpop.f32.mrb[32].mxu1 }
 0x4ca   : > { %v1984_v35 = vpop.f32.mrb[33].mxu1  ;;  %v1511_v43 = vmul.f32 %v2186_v28, %v1400_v34 }
 0x4cb   : > { %v1403_v7 = vpop.f32.mrb[34].mxu1 }
 0x4cc   : > { %v1512_v31 = vmul.f32 %v2188_v49, %v1403_v7  ;;  %v1985_v8 = vpop.f32.mrb[35].mxu1 }
 0x4cd   : > { %v1353_v9 = vpop.f32.mrb[24].mxu0 }
 0x4ce   : > { %v1526_v47 = vpack.c.bf16 %v1512_v31, %v1511_v43  ;;  %v1509_v59 = vmul.f32 %v2190_v10, %v1353_v9  ;;  %v1978_v13 = vpop.f32.mrb[25].mxu0 }
 0x4cf   : > { %v1356_v16 = vpop.f32.mrb[26].mxu0 }
 0x4d0   : > { %v1510_v61 = vmul.f32 %v2192_v15, %v1356_v16  ;;  %v1979_v23 = vpop.f32.mrb[27].mxu0  ;;  %1535 = vrot.lane.b32.xlu0 %v1526_v47, %s2433_s1 }
 0x4d1   : > { %v1494_v24 = vpop.f32.mrb[36].mxu1 }
 0x4d2   : > { %v1525_v30 = vpack.c.bf16 %v1510_v61, %v1509_v59  ;;  %v1996_v22 = vpop.f32.mrb[37].mxu1  ;;  %v1515_v11 = vmul.f32 %v2194_v29, %v1494_v24 }
 0x4d3   : > { %v1497_v33 = vpop.f32.mrb[38].mxu1 }
 0x4d4   : > { %v1516_v36 = vmul.f32 %v2196_v32, %v1497_v33  ;;  %v1997_v37 = vpop.f32.mrb[39].mxu1  ;;  %1533 = vrot.lane.b32.xlu1 %v1525_v30, %s2433_s1 }
 0x4d5   : > { %v1447_v12 = vpop.f32.mrb[28].mxu0 }
 0x4d6   : > { %v1528_v17 = vpack.c.bf16 %v1516_v36, %v1515_v11  ;;  %v1990_v39 = vpop.f32.mrb[29].mxu0  ;;  %v1513_v45 = vmul.f32 %v2198_v38, %v1447_v12 }
 0x4d7   : > { %v1450_v27 = vpop.f32.mrb[30].mxu0 }
 0x4d8   : > { %v1514_v48 = vmul.f32 %v2200_v40, %v1450_v27  ;;  %v1991_v14 = vpop.f32.mrb[31].mxu0 }
 0x4da   : > { %v1527_v50 = vpack.c.bf16 %v1514_v48, %v1513_v45 }
 0x4dc   : > { %1537 = vrot.lane.b32.xlu1 %v1527_v50, %s2433_s1 }
 0x4e0   : > { %1539 = vrot.lane.b32.xlu1 %v1528_v17, %s2433_s1 }
 0x542   : > { %v1536_v18 = vpop.permute.xlu0 %1535 }
 0x543   : > { %1547 = vst.msk [vmem:[#allocation2 + $0x8] sm:$0xff] %vm1545_vm3, %v1536_v18 }
 0x546   : > { %v1534_v51 = vpop.permute.xlu1 %1533 }
 0x547   : > { %1546 = vst.msk [vmem:[#allocation2] sm:$0xff] %vm1545_vm3, %v1534_v51 }
 0x54a   : > { %v1551_v20 = vld [vmem:[#allocation2 + $0x8] sm:$0xff] }
 0x54e   : > { %v1538_v52 = vpop.permute.xlu1 %1537  ;;  %v1550_v21 = vld [vmem:[#allocation2] sm:$0xff] }
 0x54f   : > { %1548 = vst.msk [vmem:[#allocation2 + $0x10] sm:$0xff] %vm1545_vm3, %v1538_v52  ;;  %2002 = vmatprep.mubr.msk.bf16.mxu0 %vm394_vm0, %v1550_v21 }
 0x550   : > { %2003 = vmatmul.mubr.msk.bf16.vlgmr.msra.gmra.mrb[32].mxu0 %vm394_vm0, %v1551_v20 }
 0x552   : > { %v1540_v53 = vpop.permute.xlu1 %1539 }
 0x553   : > { %1549 = vst.msk [vmem:[#allocation2 + $0x18] sm:$0xff] %vm1545_vm3, %v1540_v53 }
 0x556   : > { %v1552_v25 = vld [vmem:[#allocation2 + $0x10] sm:$0xff] }
 0x557   : > { %2006 = vmatprep.mubr.msk.bf16.mxu0 %vm394_vm0, %v1552_v25 }
 0x55a   : > { %v1553_v54 = vld [vmem:[#allocation2 + $0x18] sm:$0xff] }
 0x55b   : > { %2007 = vmatmul.mubr.msk.bf16.gmra.mrb[36].mxu0 %vm394_vm0, %v1553_v54 }
 0x623   : > { %v2004_v55 = vpop.f32.mrb[32].mxu0 }
 0x624   : > { %v1632_v41 = vadd.f32 %v2004_v55, %v1829_v26  ;;  %v1623_v56 = vpop.f32.mrb[33].mxu0 }
 0x625   : > { %v1624_v58 = vadd.f32 %v1829_v26, %v1623_v56  ;;  %v2005_v42 = vpop.f32.mrb[34].mxu0 }
 0x626   : > { %1656 = vst.msk [vmem:[%s355_s11 + $0x10] sm:$0xff] %vm394_vm0, %v1632_v41  ;;  %v1635_v60 = vadd.f32 %v2005_v42, %v1829_v26  ;;  %v1626_v44 = vpop.f32.mrb[35].mxu0 }
 0x627   : > { %1654 = vst.msk [vmem:[%s355_s11] sm:$0xff] %vm394_vm0, %v1624_v58  ;;  %v1627_v62 = vadd.f32 %v1829_v26, %v1626_v44 }
 0x628   : > { %1657 = vst.msk [vmem:[%s355_s11 + $0x18] sm:$0xff] %vm394_vm0, %v1635_v60 }
 0x629   : > { %1655 = vst.msk [vmem:[%s355_s11 + $0x8] sm:$0xff] %vm394_vm0, %v1627_v62 }
 0x62e   : > { %v2008_v46 = vpop.f32.mrb[36].mxu0 }
 0x62f   : > { %v1648_v63 = vadd.f32 %v2008_v46, %v1829_v26  ;;  %v1639_v0 = vpop.f32.mrb[37].mxu0 }
 0x630   : > { %v1640_v1 = vadd.f32 %v1829_v26, %v1639_v0  ;;  %v2009_v2 = vpop.f32.mrb[38].mxu0 }
 0x631   : > { %1660 = vst.msk [vmem:[%s355_s11 + $0x30] sm:$0xff] %vm394_vm0, %v1648_v63  ;;  %v1651_v57 = vadd.f32 %v2009_v2, %v1829_v26  ;;  %v1642_v3 = vpop.f32.mrb[39].mxu0 }
 0x632   : > { %1658 = vst.msk [vmem:[%s355_s11 + $0x20] sm:$0xff] %vm394_vm0, %v1640_v1  ;;  %v1643_v19 = vadd.f32 %v1829_v26, %v1642_v3 }
 0x633   : > { %1661 = vst.msk [vmem:[%s355_s11 + $0x38] sm:$0xff] %vm394_vm0, %v1651_v57 }
 0x634   : > { %1659 = vst.msk [vmem:[%s355_s11 + $0x28] sm:$0xff] %vm394_vm0, %v1643_v19 }
 0x635   : > { %2356 = shalt.err (!%p2353_p13)
}
 0x636   : > { %s2357_s17 = scalar_lea.hbm %s3006_s10, 1024  ;;  %s2361_s23 = scalar_lea.hbm %s3062_s7, 2048 }
 0x637   : > { %p2358_p9 = scmp.ne.s32.totalorder %s3006_s10, %s2357_s17  ;;  %p2362_p6 = scmp.lt.u32.totalorder %s3006_s10, %s3062_s7 }
 0x638   : > { %p2363_p4 = scmp.lt.u32.totalorder %s2361_s23, %s2357_s17  ;;  %p2365_p10 = scmp.lt.u32.totalorder %s2357_s17, %s3006_s10 }
 0x639   : > { %p2359_p0 = pnand %p2358_p9, %p2655_p3 }
 0x63a   : > { %p2364_p8 = por %p2363_p4, %p2362_p6 }
 0x63b   : > { %p2360_p11 = pneg %p2359_p0 }
 0x63c   : > { %p2366_p5 = por %p2365_p10, %p2364_p8 }
 0x63e   : > { %p2367_p7 = pnand %p2366_p5, %p2360_p11 }
 0x640   : > { %2370 = shalt.err (!%p2367_p7)
}
 0x641   : > { %s2435_s16 = smov 128   ;;  %s2436_s19 = smov 8  }
 0x642   : > { %2032 = dma.vmem_to_hbm [thread:$0]  (%p2655_p3), %s3008_s14, 1024, %s3006_s10, %s1663_s28, %s2435_s16, %s2435_s16, %s2436_s19  }
 0x643 PF: > { %s1692_s30 = sand.u32 1, %s2405_s24   ;;  %p3089_p12 = scmp.ne.s32.totalorder %s3072_s8, 0 }
 0x644   : > { %p3090_p1 = scmp.ge.s32.totalorder %s2417_s27, 2  ;;  %s1693_s9 = scalar_lea.sflag [#allocation5], %s1692_s30 }
 0x646   : > { %p2052_p2 = pnand %p3090_p1, %p3089_p12 }
 0x648   : > { %2400 = dma.done.wait (!%p2052_p2), %s1693_s9, 1024  }
 0x649   : > { %2402 = vsyncadd (!%p2052_p2), %s1693_s9, 4294966272  ;;  %p22_p13 = scmp.ge.s32.totalorder %s2642_s12, 4   ;;  %s3091_s24 = smov %s2409_s25 }
 0x64a   : > { %s3092_s25 = smov %s2413_s26  ;;  %s3093_s26 = smov %s2651_s29 }
 0x64b   : > { %s3094_s27 = smov %s2642_s12  ;;  %24 = sbr.rel (!%p22_p13) target bundleno = 9 (0x9), region = 109 }
 0x652   :  { %1698 = vsyncpa [#allocation4], 1 }
 0x653   :  { %1700 = vsyncpa [#allocation4 + $0x1], 1 }
 0x654   :  { %1701 = vsyncpa [#allocation7], 1 }
 0x655   :  { %1702 = vsyncpa [#allocation10], 1 }
 0x656   :  { %1703 = vsyncpa [#allocation5], 1 }
 0x657   :  { %1705 = vsyncpa [#allocation5 + $0x1], 1 }

// kernel: tpu_custom_call.1
= control target key start
LH: loop header
LB: loop body
LE: loop exit
PB: predicated region body
PF: predicated region fallthrough
CT: control target
= control target key end

     0   :  { %s3055_s0 = inlined_call_operand.hbm [shape: f32[8,16,32], index: 0, kind: input, shape index: {}]   ;;  %s3056_s1 = inlined_call_operand.hbm [shape: bf16[32,96], index: 1, kind: input, shape index: {}]   ;;  %s3057_s2 = inlined_call_operand.vmem [shape: f32[1,96], index: 2, kind: input, shape index: {}]   ;;  %s3058_s3 = inlined_call_operand.hbm [shape: bf16[32,32], index: 3, kind: input, shape index: {}]   ;;  %s3059_s4 = inlined_call_operand.vmem [shape: f32[1,32], index: 4, kind: input, shape index: {}]   ;;  %s3060_s5 = inlined_call_operand.hbm [shape: f32[2,16,16], index: 5, kind: input, shape index: {}]   ;;  %s3061_s6 = inlined_call_operand.hbm [shape: f32[4,16,16], index: 6, kind: input, shape index: {}]   ;;  %s3062_s7 = inlined_call_operand.hbm [shape: f32[8,16,32], index: 7, kind: output, shape index: {}]  }
   0x1   :  { %3070 = sst [smem:[#allocation17_spill]] %s3056_s1 }
   0x2   :  { %12 = vsyncpa [#allocation4], 0 }
   0x3   :  { %14 = vsyncpa [#allocation4 + $0x1], 0 }
   0x4   :  { %15 = vsyncpa [#allocation7], 0 }
   0x5   :  { %16 = vsyncpa [#allocation10], 0 }
   0x6   :  { %17 = vsyncpa [#allocation5], 0 }
   0x7   :  { %19 = vsyncpa [#allocation5 + $0x1], 0  ;;  %s2477_s24 = smov 0   ;;  %s2479_s25 = smov 0  }
   0x8   :  { %s2481_s26 = smov 0   ;;  %s2483_s27 = smov 0  }
   0x9 LB: > { %s2498_s28 = sadd.s32 4294967295, %s2417_s27   ;;  %s1788_s29 = sadd.s32 4294967294, %s2417_s27   ;;  %s2417_s27 = sphi %s2483_s27, %s3094_s27   ;;  %s2413_s26 = sphi %s2481_s26, %s3093_s26   ;;  %s2409_s25 = sphi %s2479_s25, %s3092_s25   ;;  %s2405_s24 = sphi %s2477_s24, %s3091_s24  }
   0xa   : > { %p45_p0 = scmp.ne.s32.totalorder %s2409_s25, %s2405_s24  ;;  %p3063_p1 = scmp.eq.s32.totalorder %s2498_s28, 0 }
   0xb   : > { %p201_p3 = scmp.eq.s32.totalorder %s1788_s29, 1  ;;  %p1789_p5 = scmp.ge.s32.totalorder %s2417_s27, 1 }
   0xc   : > { %p2507_p4 = por %p3063_p1, %p45_p0  ;;  %p208_p7 = scmp.lt.s32.totalorder %s2417_s27, 3 }
   0xd   : > { %p2512_p6 = por %p201_p3, %p45_p0  ;;  %s2419_s10 = smov [#allocation6]  }
   0xe   : > { %s3071_s30 = scalar_select %p2507_p4, 1, 0 }
   0xf   : > { %s3072_s8 = scalar_select %p2512_p6, 1, 0 }
  0x10   : > { %p2517_p8 = pnand %p1789_p5, %p208_p7  ;;  %s220_s11 = sshll.u32 %s2419_s10, 4  ;;  %s2521_s11 = int_to_ptr.vmem [resolvable:$true] %s220_s11 }
  0x11   : > { %s2420_s13 = smov [#allocation9]   ;;  %s3075_s1 = sld [smem:[#allocation17_spill]] }
  0x12   : > { %s3073_s9 = scalar_select %p2517_p8, 1, 0 }
  0x13   : > { %p2034_p9 = pneg %p2517_p8  ;;  %s252_s14 = sshll.u32 %s2420_s13, 4  ;;  %s2532_s14 = int_to_ptr.vmem [resolvable:$true] %s252_s14 }
  0x15   : > { %p2528_p11 = pnand %p2034_p9, %p3063_p1 }
  0x17   : > { %s2201_s17 = scalar_lea.hbm %s3075_s1, 256  ;;  %p2542_p13 = pneg %p2528_p11 }
  0x18   : > { %p2202_p12 = scmp.ne.s32.totalorder %s3075_s1, %s2201_s17  ;;  %p2208_p5 = scmp.lt.u32.totalorder %s2201_s17, %s3075_s1 }
  0x1a   : > { %p2204_p0 = pnand %p2542_p13, %p2202_p12 }
  0x1c   : > { %p2205_p3 = pneg %p2204_p0 }
  0x1e   : > { %p2210_p7 = pnand %p2208_p5, %p2205_p3 }
  0x20   : > { %2213 = shalt.err (!%p2210_p7)
}
  0x21   : > { %s2214_s23 = scalar_lea.vmem %s2521_s11, 256  ;;  %p2222_p2 = scmp.lt.s32.totalorder %s2521_s11, %s2521_s11 }
  0x22   : > { %p2215_p9 = scmp.ne.s32.totalorder %s2521_s11, %s2214_s23  ;;  %p2223_p6 = scmp.lt.s32.totalorder %s2214_s23, %s2214_s23 }
  0x24   : > { %p2217_p10 = pnand %p2215_p9, %p2542_p13  ;;  %p2224_p12 = por %p2223_p6, %p2222_p2 }
  0x26   : > { %p2218_p1 = pneg %p2217_p10 }
  0x28   : > { %p2225_p0 = pnand %p2224_p12, %p2218_p1 }
  0x2a   : > { %2228 = shalt.err (!%p2225_p0)
}
  0x2b   : > { %s3064_s29 = smov 64   ;;  %s3065_s10 = smov 4  }
  0x2c   : > { %2037 = dma.hbm_to_vmem [thread:$0]  (!%p2528_p11), %s3075_s1, 256, %s2521_s11, [#allocation7], %s3064_s29, %s3064_s29, %s3065_s10  }
  0x2d   : > { %s2229_s18 = scalar_lea.hbm %s3060_s5, 512 }
  0x2e   : > { %p2230_p1 = scmp.ne.s32.totalorder %s3060_s5, %s2229_s18  ;;  %p2236_p10 = scmp.lt.u32.totalorder %s2229_s18, %s3060_s5 }
  0x30   : > { %p2232_p2 = pnand %p2230_p1, %p2542_p13 }
  0x32   : > { %p2233_p6 = pneg %p2232_p2 }
  0x34   : > { %p2238_p3 = pnand %p2236_p10, %p2233_p6 }
  0x36   : > { %2241 = shalt.err (!%p2238_p3)
}
  0x37   : > { %s2242_s11 = scalar_lea.vmem %s2532_s14, 512  ;;  %p2250_p12 = scmp.lt.s32.totalorder %s2532_s14, %s2532_s14 }
  0x38   : > { %p2243_p5 = scmp.ne.s32.totalorder %s2532_s14, %s2242_s11  ;;  %p2251_p0 = scmp.lt.s32.totalorder %s2242_s11, %s2242_s11 }
  0x3a   : > { %p2245_p7 = pnand %p2243_p5, %p2542_p13  ;;  %p2252_p1 = por %p2251_p0, %p2250_p12 }
  0x3c   : > { %p2246_p9 = pneg %p2245_p7 }
  0x3e   : > { %p2253_p2 = pnand %p2252_p1, %p2246_p9 }
  0x40   : > { %2256 = shalt.err (!%p2253_p2)
}
  0x41   : > { %s3068_s13 = smov 128   ;;  %s2424_s15 = smov 8  }
  0x42   : > { %2043 = dma.hbm_to_vmem [thread:$0]  (!%p2528_p11), %s3060_s5, 512, %s2532_s14, [#allocation10], %s3068_s13, %s3068_s13, %s2424_s15  }
  0x43   : > { %s2425_s18 = smov [#allocation8]   ;;  %s2426_s21 = smov [#allocation11]  }
  0x44   : > { %s236_s19 = sshll.u32 %s2425_s18, 4  ;;  %s265_s22 = sshll.u32 %s2426_s21, 4  ;;  %s237_s19 = int_to_ptr.vmem [resolvable:$true] %s236_s19  ;;  %s2592_s22 = int_to_ptr.vmem [resolvable:$true] %s265_s22 }
  0x45   : > { %s2257_s29 = scalar_lea.hbm %s3058_s3, 256 }
  0x46   : > { %p2258_p6 = scmp.ne.s32.totalorder %s3058_s3, %s2257_s29  ;;  %p2264_p5 = scmp.lt.u32.totalorder %s2257_s29, %s3058_s3 }
  0x48   : > { %p2260_p10 = pnand %p2258_p6, %p2542_p13 }
  0x4a   : > { %p2261_p3 = pneg %p2260_p10 }
  0x4c   : > { %p2266_p7 = pnand %p2264_p5, %p2261_p3 }
  0x4e   : > { %2269 = shalt.err (!%p2266_p7)
}
  0x4f   : > { %s2270_s17 = scalar_lea.vmem %s237_s19, 256  ;;  %p2278_p1 = scmp.lt.s32.totalorder %s237_s19, %s237_s19 }
  0x50   : > { %p2271_p9 = scmp.ne.s32.totalorder %s237_s19, %s2270_s17  ;;  %p2279_p2 = scmp.lt.s32.totalorder %s2270_s17, %s2270_s17 }
  0x52   : > { %p2273_p12 = pnand %p2271_p9, %p2542_p13  ;;  %p2280_p4 = por %p2279_p2, %p2278_p1 }
  0x54   : > { %p2274_p0 = pneg %p2273_p12 }
  0x56   : > { %p2281_p8 = pnand %p2280_p4, %p2274_p0 }
  0x58   : > { %2284 = shalt.err (!%p2281_p8)
}
  0x59   : > { %s3077_s1 = smov 4   ;;  %s3078_s10 = smov 64  }
  0x5a   : > { %2040 = dma.hbm_to_vmem [thread:$0]  (!%p2528_p11), %s3058_s3, 256, %s237_s19, [#allocation7], %s3078_s10, %s3078_s10, %s3077_s1  }
  0x5b   : > { %s2285_s11 = scalar_lea.hbm %s3061_s6, 1024 }
  0x5c   : > { %p2286_p6 = scmp.ne.s32.totalorder %s3061_s6, %s2285_s11  ;;  %p2292_p10 = scmp.lt.u32.totalorder %s2285_s11, %s3061_s6 }
  0x5e   : > { %p2288_p4 = pnand %p2286_p6, %p2542_p13 }
  0x60   : > { %p2289_p8 = pneg %p2288_p4 }
  0x62   : > { %p2294_p3 = pnand %p2292_p10, %p2289_p8 }
  0x64   : > { %2297 = shalt.err (!%p2294_p3)
}
  0x65   : > { %s2298_s19 = scalar_lea.vmem %s2592_s22, 1024  ;;  %p2306_p12 = scmp.lt.s32.totalorder %s2592_s22, %s2592_s22 }
  0x66   : > { %p2299_p5 = scmp.ne.s32.totalorder %s2592_s22, %s2298_s19  ;;  %p2307_p0 = scmp.lt.s32.totalorder %s2298_s19, %s2298_s19 }
  0x68   : > { %p2301_p7 = pnand %p2299_p5, %p2542_p13  ;;  %p2308_p1 = por %p2307_p0, %p2306_p12 }
  0x6a   : > { %p2302_p9 = pneg %p2301_p7 }
  0x6c   : > { %p2309_p2 = pnand %p2308_p1, %p2302_p9 }
  0x6e   : > { %2312 = shalt.err (!%p2309_p2)
}
  0x6f   : > { %s3079_s13 = smov 128   ;;  %s2642_s12 = sadd.s32 1, %s2417_s27  }
  0x70   : > { %2046 = dma.hbm_to_vmem [thread:$0]  (!%p2528_p11), %s3061_s6, 1024, %s2592_s22, [#allocation10], %s3079_s13, %s3079_s13, %s2424_s15  }
  0x71   : > { %s29_s20 = ssub.s32 %s2417_s27, %s2642_s12  ;;  %s32_s18 = sadd.s32 1, %s2413_s26 }
  0x72   : > { %p30_p13 = scmp.eq.s32.totalorder %s29_s20, 0  ;;  %p39_p6 = scmp.ne.s32.totalorder %s2413_s26, %s2409_s25 }
  0x73   : > { %p40_p4 = scmp.eq.s32.totalorder %s2417_s27, 0  ;;  %p3080_p10 = scmp.eq.s32.totalorder %s2498_s28, 1 }
  0x74   : > { %s2651_s29 = scalar_select %p30_p13, %s2413_s26, %s32_s18  }
  0x75   : > { %p41_p8 = por %p40_p4, %p39_p6  ;;  %p2655_p3 = por %p3080_p10, %p39_p6 }
  0x76   : > { %p2059_p5 = scmp.lt.s32.totalorder %s2417_s27, 2  ;;  %s279_s23 = sand.u32 1, %s2413_s26  }
  0x77   : > { %s1795_s11 = sshll.u32 %s279_s23, 6  ;;  %s1843_s22 = sshll.u32 %s2417_s27, 10 }
  0x78   : > { %s2665_s17 = scalar_lea.hbm %s3055_s0, %s1843_s22  ;;  %s283_s19 = scalar_lea.vmem [#allocation3], %s1795_s11 }
  0x79   : > { %s291_s1 = sshll.u32 %s283_s19, 4  ;;  %p2669_p11 = pnand %p2059_p5, %p41_p8  ;;  %s2667_s1 = int_to_ptr.vmem [resolvable:$true] %s291_s1 }
  0x7a   : > { %s2673_s20 = scalar_lea.sflag [#allocation4], %s279_s23  ;;  %s2313_s18 = scalar_lea.hbm %s2665_s17, 1024 }
  0x7b   : > { %p2314_p7 = scmp.ne.s32.totalorder %s2665_s17, %s2313_s18  ;;  %p2315_p9 = pneg %p2669_p11 }
  0x7c   : > { %s2318_s16 = scalar_lea.hbm %s3055_s0, 2048  ;;  %p2319_p1 = scmp.lt.u32.totalorder %s2665_s17, %s3055_s0 }
  0x7d   : > { %p2316_p12 = pnand %p2315_p9, %p2314_p7  ;;  %p2320_p2 = scmp.lt.u32.totalorder %s2318_s16, %s2313_s18 }
  0x7e   : > { %p2322_p6 = scmp.lt.u32.totalorder %s2313_s18, %s2665_s17 }
  0x7f   : > { %p2317_p0 = pneg %p2316_p12  ;;  %p2321_p13 = por %p2320_p2, %p2319_p1 }
  0x81   : > { %p2323_p4 = por %p2322_p6, %p2321_p13 }
  0x83   : > { %p2324_p8 = pnand %p2323_p4, %p2317_p0 }
  0x85   : > { %2327 = shalt.err (!%p2324_p8)
}
  0x86   : > { %s2328_s23 = scalar_lea.vmem %s2667_s1, 1024  ;;  %s2427_s11 = smov [#allocation3]  }
  0x87   : > { %p2329_p10 = scmp.ne.s32.totalorder %s2667_s1, %s2328_s23  ;;  %s2333_s22 = sshll.u32 %s2427_s11, 4  ;;  %s2334_s22 = int_to_ptr.vmem [resolvable:$false] %s2333_s22 }
  0x88   : > { %s2335_s14 = scalar_lea.vmem %s2334_s22, 2048  ;;  %p2336_p12 = scmp.lt.s32.totalorder %s2667_s1, %s2334_s22 }
  0x89   : > { %p2331_p5 = pnand %p2329_p10, %p2315_p9  ;;  %p2337_p1 = scmp.lt.s32.totalorder %s2335_s14, %s2328_s23 }
  0x8b   : > { %p2332_p7 = pneg %p2331_p5  ;;  %p2338_p2 = por %p2337_p1, %p2336_p12 }
  0x8d   : > { %p2339_p13 = pnand %p2338_p2, %p2332_p7 }
  0x8f   : > { %2342 = shalt.err (!%p2339_p13)
}
  0x90   : > { %2050 = dma.hbm_to_vmem [thread:$0]  (!%p2669_p11), %s2665_s17, 1024, %s2667_s1, %s2673_s20, %s3079_s13, %s3079_s13, %s2424_s15  }
  0x91   : > { %p3083_p9 = scmp.ne.s32.totalorder %s3073_s9, 0 }
  0x92   : > { %s2707_s18 = sand.u32 (!%p3083_p9), 1, %s2409_s25   ;;  %p3084_p0 = scmp.ne.s32.totalorder (!%p3083_p9), %s3071_s30, 0 }
  0x93   : > { %303 = sbr.rel (%p3083_p9) target bundleno = 1603 (0x643), region = 48  ;;  %s1800_s16 = sshll.u32 (!%p3083_p9), %s2707_s18, 6 }
  0x94   : > { %s306_s19 = scalar_lea.sflag (!%p3083_p9), [#allocation4], %s2707_s18  ;;  %s309_s10 = scalar_lea.vmem (!%p3083_p9), [#allocation3], %s1800_s16 }
  0x9a   : > { %2388 = dma.done.wait (%p3084_p0), %s306_s19, 1024  }
  0x9b   : > { %2390 = vsyncadd (%p3084_p0), %s306_s19, 4294966272  ;;  %p3085_p11 = scmp.eq.s32.totalorder %s2498_s28, 0 }
  0x9d   : > { %2392 = dma.done.wait (%p3085_p11), [#allocation7], 512   ;;  %p3086_p6 = pmov %p3085_p11 }
  0x9f   : > { %2394 = vsyncadd (%p3086_p6), [#allocation7], 4294966784  ;;  %p3087_p4 = pmov %p3086_p6 }
  0xa1   : > { %2396 = dma.done.wait (%p3087_p4), [#allocation10], 1536   ;;  %p3088_p8 = pmov %p3087_p4 }
  0xa2   : > { %v2133_v0 = vld [vmem:[#allocation6] sm:$0xff]   ;;  %v2134_v1 = vld [vmem:[#allocation6 + $0x8] sm:$0xff]   ;;  %vm394_vm0 = vcmask 261120   ;;  %v361_v7 = vld [vmem:[%s309_s10 + $0x10] sm:$0xff]  ;;  %v2428_v28 = vmov 0.0   ;;  %s2429_s15 = smov 112  }
  0xa3   : > { %2398 = vsyncadd (%p3088_p8), [#allocation10], 4294965760  ;;  %1890 = vmatprep.subr.bf16.mxu0 %v2133_v0  ;;  %2010 = vmatprep.subr.bf16.mxu1 %v2133_v0  ;;  %v359_v2 = vld [vmem:[%s309_s10] sm:$0xff]  ;;  %v360_v3 = vld [vmem:[%s309_s10 + $0x8] sm:$0xff]  ;;  %vm2430_vm1 = vmmov 0   ;;  %s2431_s13 = smov 96  }
  0xa4   : > { %v363_v4 = vld [vmem:[%s309_s10 + $0x20] sm:$0xff]  ;;  %1891 = vmatpush3.bf16.msra.mxu0 %v2133_v0  ;;  %2012 = vmatpush3.bf16.msra.mxu1 %v2133_v0  ;;  %v367_v5 = vpack.c.bf16 %v360_v3, %v359_v2  ;;  %v364_v6 = vld [vmem:[%s309_s10 + $0x28] sm:$0xff]  ;;  %v362_v8 = vld [vmem:[%s309_s10 + $0x18] sm:$0xff]  ;;  %vm515_vm2 = vcmask 130048   ;;  %s2432_s17 = smov 64   ;;  %s2433_s1 = smov 16  }
  0xa5   : > { %1892 = vmatprep.subr.bf16.mxu0 %v2134_v1  ;;  %2011 = vmatprep.subr.bf16.mxu1 %v2134_v1  ;;  %v369_v9 = vpack.c.bf16 %v364_v6, %v363_v4  ;;  %v365_v10 = vld [vmem:[%s309_s10 + $0x30] sm:$0xff]  ;;  %v366_v11 = vld [vmem:[%s309_s10 + $0x38] sm:$0xff]  ;;  %v368_v12 = vpack.c.bf16 %v362_v8, %v361_v7  ;;  %v1806_v15 = vld [vmem:[%s3057_s2] ss:$0 sm:$0xff]  ;;  %vm1545_vm3 = vcmask 261248   ;;  %s355_s11 = scalar_lea.vmem [#allocation12], %s1800_s16 }
  0xa6   : > { %1894 = vmatprep.mubr.msk.bf16.mxu0 %vm394_vm0, %v367_v5  ;;  %v370_v13 = vpack.c.bf16 %v366_v11, %v365_v10  ;;  %v913_v10 = vld [vmem:[#allocation9] sm:$0xff]  ;;  %s1845_s22 = sshll.u32 %s2498_s28, 10  ;;  %s1677_s14 = sshll.u32 %s355_s11, 4  ;;  %s3008_s14 = int_to_ptr.vmem [resolvable:$true] %s1677_s14 }
  0xa7   : > { %1898 = vmatprep.mubr.msk.bf16.mxu1 %vm394_vm0, %v369_v9  ;;  %s3006_s10 = scalar_lea.hbm %s3062_s7, %s1845_s22  ;;  %s1663_s28 = scalar_lea.sflag [#allocation5], %s2707_s18 }
  0xa8   : > { %1893 = vmatpush3.bf16.msra.mxu0 %v2134_v1  ;;  %2013 = vmatpush3.bf16.msra.mxu1 %v2134_v1  ;;  %s2343_s30 = scalar_lea.vmem %s3008_s14, 1024  ;;  %s2434_s9 = smov [#allocation12]  }
  0xa9   : > { %1902 = vmatprep.subr.bf16.mxu1 %v2428_v28  ;;  %1914 = vmatprep.subr.bf16.mxu0 %v2428_v28  ;;  %p2344_p10 = scmp.ne.s32.totalorder %s3008_s14, %s2343_s30 }
  0xab   : > { %1895 = vmatmul.mubr.msk.bf16.vlgmr.msra.gmra.mrb[0].mxu0 %vm394_vm0, %v368_v12  ;;  %1899 = vmatmul.mubr.msk.bf16.vlgmr.msra.gmra.mrb[0].mxu1 %vm394_vm0, %v370_v13  ;;  %v2812_v12 = vld [vmem:[#allocation11] sm:$0xff]  ;;  %p2345_p5 = pnand %p2344_p10, %p2655_p3 }
  0xac   : > { %1904 = vmatprep.mubr.msk.bf16.mxu1 %vm2430_vm1, %v2428_v28  ;;  %1916 = vmatprep.mubr.msk.bf16.mxu0 %vm2430_vm1, %v2428_v28 }
  0xad   : > { %p2346_p7 = pneg %p2345_p5 }
 0x17e   : > { %v1896_v14 = vpop.f32.mrb[0].mxu0  ;;  %v1900_v16 = vpop.f32.mrb[0].mxu1 }
 0x17f   : > { %v466_v17 = vadd.f32 %v1900_v16, %v1806_v15  ;;  %v441_v18 = vpop.f32.mrb[1].mxu0  ;;  %v457_v19 = vpop.f32.mrb[1].mxu1  ;;  %v450_v23 = vadd.f32 %v1896_v14, %v1806_v15 }
 0x180   : > { %v458_v20 = vadd.f32 %v1806_v15, %v457_v19  ;;  %v1897_v21 = vpop.f32.mrb[2].mxu0  ;;  %v1901_v22 = vpop.f32.mrb[2].mxu1  ;;  %v442_v29 = vadd.f32 %v1806_v15, %v441_v18 }
 0x181   : > { %v453_v24 = vadd.f32 %v1897_v21, %v1806_v15  ;;  %v469_v25 = vadd.f32 %v1901_v22, %v1806_v15  ;;  %v444_v26 = vpop.f32.mrb[3].mxu0  ;;  %v460_v27 = vpop.f32.mrb[3].mxu1 }
 0x182   : > { %v445_v30 = vadd.f32 %v1806_v15, %v444_v26  ;;  %v461_v31 = vadd.f32 %v1806_v15, %v460_v27  ;;  %v914_v15 = vld [vmem:[#allocation9 + $0x8] sm:$0xff] }
 0x183   : > { %v2118_v32 = vpack.i.bf16 %v453_v24, %v450_v23  ;;  %v2734_v33 = vpack.c.bf16 %v453_v24, %v450_v23  ;;  %v2128_v34 = vpack.i.bf16 %v469_v25, %v466_v17  ;;  %v2736_v35 = vpack.c.bf16 %v469_v25, %v466_v17  ;;  %v2821_v26 = vld [vmem:[#allocation11 + $0x28] sm:$0xff] }
 0x184   : > { %v504_v36 = vpack.c.bf16 %v445_v30, %v442_v29  ;;  %v506_v37 = vpack.c.bf16 %v461_v31, %v458_v20  ;;  %v2123_v38 = vpack.i.bf16 %v461_v31, %v458_v20  ;;  %v2113_v39 = vpack.i.bf16 %v445_v30, %v442_v29  ;;  %v2817_v20 = vld [vmem:[#allocation11 + $0x20] sm:$0xff]  ;;  %v2823_v27 = vld [vmem:[#allocation11 + $0x8] sm:$0xff] }
 0x186   : > { %2124 = vrot.lane.b32.xlu1 %v2123_v38, %s2429_s15  ;;  %2114 = vrot.lane.b32.xlu0 %v2113_v39, %s2429_s15 }
 0x18a   : > { %2129 = vrot.lane.b32.xlu1 %v2128_v34, %s2429_s15  ;;  %2119 = vrot.lane.b32.xlu0 %v2118_v32, %s2429_s15  ;;  %s2347_s15 = sshll.u32 %s2434_s9, 4  ;;  %s2348_s15 = int_to_ptr.vmem [resolvable:$false] %s2347_s15 }
 0x18b   : > { %p2350_p12 = scmp.lt.s32.totalorder %s3008_s14, %s2348_s15 }
 0x18e   : > { %564 = vrot.lane.b32.xlu1 %v2734_v33, %s2431_s13  ;;  %513 = vrot.lane.b32.xlu0 %v504_v36, %s2431_s13 }
 0x192   : > { %664 = vrot.lane.b32.xlu1 %v2736_v35, %s2431_s13  ;;  %614 = vrot.lane.b32.xlu0 %v506_v37, %s2431_s13 }
 0x1f8   : > { %v2125_v40 = vpop.permute.xlu1 %2124  ;;  %v2115_v41 = vpop.permute.xlu0 %2114 }
 0x1f9   : > { %v2127_v42 = vunpack.i.h.bf16 %v2125_v40  ;;  %v2126_v43 = vunpack.i.l.bf16 %v2125_v40  ;;  %v2117_v44 = vunpack.i.h.bf16 %v2115_v41  ;;  %v2116_v45 = vunpack.i.l.bf16 %v2115_v41 }
 0x1fb   : > { %v508_v46 = vpack.c.bf16 %v2117_v44, %v2116_v45  ;;  %v2748_v49 = vpack.c.bf16 %v2127_v42, %v2126_v43  ;;  %v936_v44 = vld [vmem:[#allocation11 + $0x18] sm:$0xff] }
 0x1fc   : > { %v2130_v47 = vpop.permute.xlu1 %2129  ;;  %v2120_v48 = vpop.permute.xlu0 %2119 }
 0x1fd   : > { %v2122_v50 = vunpack.i.h.bf16 %v2120_v48  ;;  %v2121_v51 = vunpack.i.l.bf16 %v2120_v48  ;;  %714 = vrot.lane.b32.xlu0 %v508_v46, %s2431_s13  ;;  %v2132_v52 = vunpack.i.h.bf16 %v2130_v47  ;;  %v2131_v53 = vunpack.i.l.bf16 %v2130_v47 }
 0x1ff   : > { %v509_v54 = vpack.c.bf16 %v2122_v50, %v2121_v51  ;;  %v2755_v57 = vpack.c.bf16 %v2132_v52, %v2131_v53  ;;  %v939_v50 = vld [vmem:[#allocation11 + $0x30] sm:$0xff] }
 0x200   : > { %v514_v55 = vpop.permute.xlu0 %513  ;;  %v565_v60 = vpop.permute.xlu1 %564 }
 0x201   : > { %v520_v56 = vsel %vm515_vm2, %v514_v55, 0  ;;  %764 = vrot.lane.b32.xlu1 %v509_v54, %s2431_s13  ;;  %814 = vrot.lane.b32.xlu0 %v2748_v49, %s2431_s13  ;;  %v570_v61 = vsel %vm515_vm2, %v565_v60, 0  ;;  %v940_v55 = vld [vmem:[#allocation11 + $0x38] sm:$0xff] }
 0x202   : > { %1903 = vmatpush3.bf16.xpose.msra.mxu1 %v520_v56 }
 0x203   : > { %1908 = vmatprep.subr.bf16.mxu1 %v2428_v28 }
 0x204   : > { %v615_v58 = vpop.permute.xlu0 %614  ;;  %v665_v62 = vpop.permute.xlu1 %664 }
 0x205   : > { %v620_v59 = vsel %vm515_vm2, %v615_v58, 0  ;;  %864 = vrot.lane.b32.xlu1 %v2755_v57, %s2431_s13  ;;  %1172 = vrot.lane.b32.xlu0 %v2734_v33, %s2432_s17  ;;  %v670_v63 = vsel %vm515_vm2, %v665_v62, 0  ;;  %s2349_s13 = scalar_lea.vmem %s2348_s15, 2048 }
 0x206   : > { %1915 = vmatpush3.bf16.xpose.msra.mxu0 %v620_v59  ;;  %p2351_p1 = scmp.lt.s32.totalorder %s2349_s13, %s2343_s30 }
 0x207   : > { %1926 = vmatprep.subr.bf16.mxu0 %v2428_v28 }
 0x208   : > { %p2352_p2 = por %p2351_p1, %p2350_p12 }
 0x209   : > { %1125 = vrot.lane.b32.xlu1 %v504_v36, %s2432_s17  ;;  %1313 = vrot.lane.b32.xlu0 %v508_v46, %s2432_s17 }
 0x20a   : > { %1905 = vmatmul.mubr.msk.bf16.vlgmr.msra.gmra.mrb[4].mxu1 %vm515_vm2, %v504_v36  ;;  %v935_v36 = vld [vmem:[#allocation11 + $0x10] sm:$0xff]  ;;  %p2353_p13 = pnand %p2352_p2, %p2346_p7 }
 0x20b   : > { %1909 = vmatpush3.bf16.xpose.msra.mxu1 %v570_v61  ;;  %1910 = vmatprep.mubr.msk.bf16.mxu1 %vm2430_vm1, %v2428_v28 }
 0x20c   : > { %1920 = vmatprep.subr.bf16.mxu1 %v2428_v28 }
 0x20d   : > { %1219 = vrot.lane.b32.xlu1 %v506_v37, %s2432_s17  ;;  %1917 = vmatmul.mubr.msk.bf16.vlgmr.msra.gmra.mrb[4].mxu0 %vm515_vm2, %v506_v37 }
 0x20e   : > { %1928 = vmatprep.mubr.msk.bf16.mxu0 %vm2430_vm1, %v2428_v28 }
 0x211   : > { %1266 = vrot.lane.b32.xlu1 %v2736_v35, %s2432_s17 }
 0x212   : > { %1911 = vmatmul.mubr.msk.bf16.vlgmr.msra.gmra.mrb[8].mxu1 %vm515_vm2, %v2734_v33 }
 0x213   : > { %1921 = vmatpush3.bf16.xpose.msra.mxu1 %v670_v63  ;;  %1922 = vmatprep.mubr.msk.bf16.mxu1 %vm2430_vm1, %v2428_v28 }
 0x214   : > { %1932 = vmatprep.subr.bf16.mxu1 %v2428_v28 }
 0x215   : > { %1360 = vrot.lane.b32.xlu1 %v509_v54, %s2432_s17 }
 0x21a   : > { %1923 = vmatmul.mubr.msk.bf16.vlgmr.msra.gmra.mrb[12].mxu1 %vm515_vm2, %v2736_v35 }
 0x21b   : > { %1934 = vmatprep.mubr.msk.bf16.mxu1 %vm2430_vm1, %v2428_v28 }
 0x26f   : > { %v715_v0 = vpop.permute.xlu0 %714 }
 0x270   : > { %v720_v1 = vsel %vm515_vm2, %v715_v0, 0 }
 0x271   : > { %1927 = vmatpush3.bf16.xpose.msra.mxu0 %v720_v1  ;;  %v915_v1 = vld [vmem:[#allocation9 + $0x10] sm:$0xff] }
 0x272   : > { %1938 = vmatprep.subr.bf16.mxu0 %v2428_v28 }
 0x273   : > { %v765_v2 = vpop.permute.xlu1 %764  ;;  %v815_v4 = vpop.permute.xlu0 %814 }
 0x274   : > { %v770_v3 = vsel %vm515_vm2, %v765_v2, 0  ;;  %v820_v5 = vsel %vm515_vm2, %v815_v4, 0  ;;  %v916_v4 = vld [vmem:[#allocation9 + $0x18] sm:$0xff] }
 0x275   : > { %1933 = vmatpush3.bf16.xpose.msra.mxu1 %v770_v3 }
 0x276   : > { %1944 = vmatprep.subr.bf16.mxu1 %v2428_v28 }
 0x277   : > { %v865_v6 = vpop.permute.xlu1 %864  ;;  %v1173_v9 = vpop.permute.xlu0 %1172 }
 0x278   : > { %1929 = vmatmul.mubr.msk.bf16.vlgmr.msra.gmra.mrb[8].mxu0 %vm515_vm2, %v508_v46  ;;  %v870_v7 = vsel %vm515_vm2, %v865_v6, 0 }
 0x279   : > { %1939 = vmatpush3.bf16.xpose.msra.mxu0 %v820_v5  ;;  %1940 = vmatprep.mubr.msk.bf16.mxu0 %vm2430_vm1, %v2428_v28 }
 0x27a   : > { %1950 = vmatprep.subr.bf16.mxu0 %v2428_v28 }
 0x27b   : > { %v1126_v8 = vpop.permute.xlu1 %1125 }
 0x27c   : > { %1935 = vmatmul.mubr.msk.bf16.vlgmr.msra.gmra.mrb[16].mxu1 %vm515_vm2, %v509_v54 }
 0x27d   : > { %1945 = vmatpush3.bf16.xpose.msra.mxu1 %v870_v7  ;;  %1946 = vmatprep.mubr.msk.bf16.mxu1 %vm2430_vm1, %v2428_v28 }
 0x27e   : > { %1956 = vmatprep.subr.bf16.mxu1 %v2428_v28 }
 0x280   : > { %1941 = vmatmul.mubr.msk.bf16.vlgmr.msra.gmra.mrb[12].mxu0 %vm515_vm2, %v2748_v49 }
 0x281   : > { %1951 = vmatpush3.bf16.msra.mxu0 %v1126_v8  ;;  %1952 = vmatprep.mubr.msk.bf16.mxu0 %vm2430_vm1, %v2428_v28 }
 0x282   : > { %1962 = vmatprep.subr.bf16.mxu0 %v2428_v28 }
 0x284   : > { %1947 = vmatmul.mubr.msk.bf16.vlgmr.msra.gmra.mrb[20].mxu1 %vm515_vm2, %v2755_v57 }
 0x285   : > { %1957 = vmatpush3.bf16.msra.mxu1 %v1173_v9  ;;  %1958 = vmatprep.mubr.msk.bf16.mxu1 %vm2430_vm1, %v2428_v28 }
 0x286   : > { %1968 = vmatprep.subr.bf16.mxu1 %v2428_v28 }
 0x2dd   : > { %v556_v11 = vpop.f32.mrb[4].mxu1 }
 0x2de   : > { %v917_v13 = vadd.f32 %v913_v10, %v556_v11  ;;  %v1906_v14 = vpop.f32.mrb[5].mxu1 }
 0x2df   : > { %v559_v16 = vpop.f32.mrb[6].mxu1 }
 0x2e0   : > { %v1907_v17 = vpop.f32.mrb[7].mxu1  ;;  %v656_v18 = vpop.f32.mrb[4].mxu0  ;;  %v2815_v19 = vadd.f32 %v2812_v12, %v917_v13  ;;  %v918_v21 = vadd.f32 %v914_v15, %v559_v16 }
 0x2e1   : > { %v921_v22 = vadd.f32 %v913_v10, %v656_v18  ;;  %v1918_v23 = vpop.f32.mrb[5].mxu0 }
 0x2e2   : > { %v957_v24 = vsel %vm515_vm2, %v2815_v19, -inf  ;;  %v659_v25 = vpop.f32.mrb[6].mxu0  ;;  %v2834_v35 = vadd.f32 %v2823_v27, %v918_v21 }
 0x2e3   : > { %958 = vmax.xlane.f32.xlu0 %v957_v24  ;;  %v922_v29 = vadd.f32 %v914_v15, %v659_v25  ;;  %v1919_v30 = vpop.f32.mrb[7].mxu0  ;;  %v2826_v31 = vadd.f32 %v2817_v20, %v921_v22 }
 0x2e4   : > { %v960_v45 = vsel %vm515_vm2, %v2834_v35, -inf }
 0x2e5   : > { %v606_v32 = vpop.f32.mrb[8].mxu1  ;;  %v969_v33 = vsel %vm515_vm2, %v2826_v31, -inf  ;;  %v2831_v34 = vadd.f32 %v2821_v26, %v922_v29 }
 0x2e6   : > { %v919_v37 = vadd.f32 %v913_v10, %v606_v32  ;;  %v1912_v38 = vpop.f32.mrb[9].mxu1  ;;  %970 = vmax.xlane.f32.xlu1 %v969_v33 }
 0x2e7   : > { %v609_v39 = vpop.f32.mrb[10].mxu1  ;;  %v972_v40 = vsel %vm515_vm2, %v2831_v34, -inf }
 0x2e8   : > { %v920_v41 = vadd.f32 %v914_v15, %v609_v39  ;;  %v1913_v42 = vpop.f32.mrb[11].mxu1  ;;  %973 = vmax.xlane.f32.xlu0 %v972_v40  ;;  %v2838_v43 = vadd.f32 %v935_v36, %v919_v37 }
 0x2ea   : > { %961 = vmax.xlane.f32.xlu1 %v960_v45  ;;  %v963_v46 = vsel %vm515_vm2, %v2838_v43, -inf  ;;  %v2844_v47 = vadd.f32 %v936_v44, %v920_v41 }
 0x2ec   : > { %964 = vmax.xlane.f32.xlu0 %v963_v46  ;;  %v966_v54 = vsel %vm515_vm2, %v2844_v47, -inf }
 0x2ed   : > { %v706_v48 = vpop.f32.mrb[12].mxu1 }
 0x2ee   : > { %v923_v51 = vadd.f32 %v913_v10, %v706_v48  ;;  %v1924_v52 = vpop.f32.mrb[13].mxu1 }
 0x2ef   : > { %v709_v53 = vpop.f32.mrb[14].mxu1 }
 0x2f0   : > { %v924_v56 = vadd.f32 %v914_v15, %v709_v53  ;;  %v1925_v58 = vpop.f32.mrb[15].mxu1  ;;  %967 = vmax.xlane.f32.xlu0 %v966_v54  ;;  %v2848_v59 = vadd.f32 %v939_v50, %v923_v51  ;;  %v1220_v51 = vpop.permute.xlu1 %1219 }
 0x2f2   : > { %v975_v60 = vsel %vm515_vm2, %v2848_v59, -inf  ;;  %v2852_v61 = vadd.f32 %v940_v55, %v924_v56 }
 0x2f3   : > { %976 = vmax.xlane.f32.xlu1 %v975_v60 }
 0x2f4   : > { %v978_v62 = vsel %vm515_vm2, %v2852_v61, -inf  ;;  %v1267_v52 = vpop.permute.xlu1 %1266 }
 0x2f5   : > { %979 = vmax.xlane.f32.xlu0 %v978_v62 }
 0x2f8   : > { %v1361_v53 = vpop.permute.xlu1 %1360 }
 0x34b   : > { %v756_v63 = vpop.f32.mrb[8].mxu0 }
 0x34c   : > { %v1930_v0 = vpop.f32.mrb[9].mxu0  ;;  %v925_v6 = vadd.f32 %v915_v1, %v756_v63 }
 0x34d   : > { %v759_v2 = vpop.f32.mrb[10].mxu0 }
 0x34e   : > { %v1931_v3 = vpop.f32.mrb[11].mxu0  ;;  %v926_v10 = vadd.f32 %v916_v4, %v759_v2  ;;  %v2863_v21 = vadd.f32 %v2812_v12, %v925_v6 }
 0x34f   : > { %v806_v5 = vpop.f32.mrb[16].mxu1 }
 0x350   : > { %v927_v7 = vadd.f32 %v915_v1, %v806_v5  ;;  %v1936_v8 = vpop.f32.mrb[17].mxu1  ;;  %v2868_v25 = vadd.f32 %v2823_v27, %v926_v10 }
 0x351   : > { %v809_v9 = vpop.f32.mrb[18].mxu1 }
 0x352   : > { %v928_v11 = vadd.f32 %v916_v4, %v809_v9  ;;  %v1937_v13 = vpop.f32.mrb[19].mxu1  ;;  %v2856_v14 = vadd.f32 %v935_v36, %v927_v7  ;;  %v981_v36 = vsel %vm515_vm2, %v2863_v21, -inf  ;;  %v984_v40 = vsel %vm515_vm2, %v2868_v25, -inf }
 0x353   : > { %v856_v15 = vpop.f32.mrb[12].mxu0 }
 0x354   : > { %v1942_v16 = vpop.f32.mrb[13].mxu0  ;;  %v987_v17 = vsel %vm515_vm2, %v2856_v14, -inf  ;;  %v2860_v18 = vadd.f32 %v936_v44, %v928_v11  ;;  %v929_v30 = vadd.f32 %v915_v1, %v856_v15 }
 0x355   : > { %988 = vmax.xlane.f32.xlu1 %v987_v17  ;;  %v859_v22 = vpop.f32.mrb[14].mxu0 }
 0x356   : > { %v1943_v23 = vpop.f32.mrb[15].mxu0  ;;  %v990_v24 = vsel %vm515_vm2, %v2860_v18, -inf  ;;  %v930_v12 = vadd.f32 %v916_v4, %v859_v22  ;;  %v2881_v44 = vadd.f32 %v2817_v20, %v929_v30  ;;  %v1314_v20 = vpop.permute.xlu0 %1313 }
 0x357   : > { %v906_v29 = vpop.f32.mrb[20].mxu1  ;;  %991 = vmax.xlane.f32.xlu0 %v990_v24 }
 0x358   : > { %v931_v32 = vadd.f32 %v915_v1, %v906_v29  ;;  %v1948_v33 = vpop.f32.mrb[21].mxu1  ;;  %v2886_v46 = vadd.f32 %v2821_v26, %v930_v12  ;;  %v993_v48 = vsel %vm515_vm2, %v2881_v44, -inf }
 0x359   : > { %v909_v37 = vpop.f32.mrb[22].mxu1  ;;  %982 = vmax.xlane.f32.xlu1 %v981_v36 }
 0x35a   : > { %v932_v38 = vadd.f32 %v916_v4, %v909_v37  ;;  %v1949_v39 = vpop.f32.mrb[23].mxu1  ;;  %v2874_v41 = vadd.f32 %v939_v50, %v931_v32  ;;  %v996_v50 = vsel %vm515_vm2, %v2886_v46, -inf }
 0x35b   : > { %985 = vmax.xlane.f32.xlu0 %v984_v40 }
 0x35c   : > { %v999_v27 = vsel %vm515_vm2, %v2874_v41, -inf  ;;  %v2878_v42 = vadd.f32 %v940_v55, %v932_v38 }
 0x35d   : > { %1000 = vmax.xlane.f32.xlu1 %v999_v27 }
 0x35e   : > { %v1002_v45 = vsel %vm515_vm2, %v2878_v42, -inf }
 0x35f   : > { %1003 = vmax.xlane.f32.xlu0 %v1002_v45 }
 0x361   : > { %994 = vmax.xlane.f32.xlu1 %v993_v48 }
 0x363   : > { %997 = vmax.xlane.f32.xlu0 %v996_v50 }
 0x370   : > { %v959_v54 = vpop.xlane.xlu0 %958 }
 0x371   : > { %v1005_v26 = vsub.f32 %v2815_v19, %v959_v54 }
 0x372   : > { %1454 = vrot.lane.b32.xlu1 %v2755_v57, %s2432_s17 }
 0x373   : > { %v971_v55 = vpop.xlane.xlu1 %970  ;;  %v1021_v58 = vmul.f32 1.442695, %v1005_v26 }
 0x374   : > { %v1009_v57 = vsub.f32 %v2826_v31, %v971_v55 }
 0x375   : > { %v974_v56 = vpop.xlane.xlu0 %973  ;;  %2137 = vpow2.f32 %v1021_v58 }
 0x376   : > { %v1010_v62 = vsub.f32 %v2831_v34, %v974_v56  ;;  %v1029_v6 = vmul.f32 1.442695, %v1009_v57 }
 0x377   : > { %v962_v60 = vpop.xlane.xlu1 %961 }
 0x378   : > { %v1006_v63 = vsub.f32 %v2834_v35, %v962_v60  ;;  %v1031_v3 = vmul.f32 1.442695, %v1010_v62 }
 0x379   : > { %1407 = vrot.lane.b32.xlu0 %v2748_v49, %s2432_s17  ;;  %v965_v0 = vpop.xlane.xlu0 %964 }
 0x37a   : > { %v1023_v1 = vmul.f32 1.442695, %v1006_v63  ;;  %v1007_v2 = vsub.f32 %v2838_v43, %v965_v0 }
 0x37c   : > { %2139 = vpow2.f32 %v1023_v1  ;;  %v1025_v19 = vmul.f32 1.442695, %v1007_v2 }
 0x37d   : > { %v968_v4 = vpop.xlane.xlu0 %967  ;;  %2141 = vpow2.f32 %v1031_v3 }
 0x37e   : > { %v1008_v5 = vsub.f32 %v2844_v47, %v968_v4  ;;  %2143 = vpow2.f32 %v1025_v19 }
 0x37f   : > { %v2904_v8 = vpop.eup %2137 }
 0x380   : > { %v1027_v34 = vmul.f32 1.442695, %v1008_v5  ;;  %v977_v35 = vpop.xlane.xlu1 %976 }
 0x381   : > { %v1011_v49 = vsub.f32 %v2848_v59, %v977_v35 }
 0x382   : > { %2145 = vpow2.f32 %v1027_v34  ;;  %v980_v7 = vpop.xlane.xlu0 %979 }
 0x383   : > { %v1012_v43 = vsub.f32 %v2852_v61, %v980_v7  ;;  %2147 = vpow2.f32 %v1029_v6  ;;  %v1033_v10 = vmul.f32 1.442695, %v1011_v49 }
 0x385   : > { %v1035_v31 = vmul.f32 1.442695, %v1012_v43 }
 0x386   : > { %v2906_v9 = vpop.eup %2139 }
 0x387   : > { %v1117_v47 = vpack.c.bf16 %v2906_v9, %v2904_v8  ;;  %2149 = vpow2.f32 %v1035_v31  ;;  %v2911_v11 = vpop.eup %2141  ;;  %v1056_v7 = vsel %vm515_vm2, %v2906_v9, 0.0 }
 0x388   : > { %2151 = vpow2.f32 %v1033_v10  ;;  %v2915_v59 = vpop.eup %2143  ;;  %v1068_v10 = vsel %vm515_vm2, %v2911_v11, 0.0 }
 0x389   : > { %1953 = vmatmul.mubr.msk.bf16.vlgmr.msra.gmra.mrb[16].mxu0 %vm515_vm2, %v1117_v47  ;;  %v1059_v49 = vsel %vm515_vm2, %v2915_v59, 0.0 }
 0x38a   : > { %1963 = vmatpush3.bf16.msra.mxu0 %v1220_v51  ;;  %1964 = vmatprep.mubr.msk.bf16.mxu0 %vm2430_vm1, %v2428_v28 }
 0x38b   : > { %1974 = vmatprep.subr.bf16.mxu0 %v2428_v28 }
 0x38c   : > { %v2918_v61 = vpop.eup %2145 }
 0x38d   : > { %v1118_v13 = vpack.c.bf16 %v2918_v61, %v2915_v59  ;;  %v2922_v15 = vpop.eup %2147  ;;  %v1062_v31 = vsel %vm515_vm2, %v2918_v61, 0.0 }
 0x38e   : > { %v1119_v16 = vpack.c.bf16 %v2911_v11, %v2922_v15  ;;  %v1065_v43 = vsel %vm515_vm2, %v2922_v15, 0.0 }
 0x38f   : > { %1959 = vmatmul.mubr.msk.bf16.vlgmr.msra.gmra.mrb[24].mxu1 %vm515_vm2, %v1118_v13 }
 0x390   : > { %1969 = vmatpush3.bf16.msra.mxu1 %v1267_v52  ;;  %1970 = vmatprep.mubr.msk.bf16.mxu1 %vm2430_vm1, %v2428_v28 }
 0x391   : > { %1965 = vmatmul.mubr.msk.bf16.vlgmr.msra.gmra.mrb[20].mxu0 %vm515_vm2, %v1119_v16  ;;  %1980 = vmatprep.subr.bf16.mxu1 %v2428_v28  ;;  %v2931_v17 = vpop.eup %2149 }
 0x392   : > { %1975 = vmatpush3.bf16.msra.mxu0 %v1314_v20  ;;  %1976 = vmatprep.mubr.msk.bf16.mxu0 %vm2430_vm1, %v2428_v28  ;;  %v2936_v22 = vpop.eup %2151  ;;  %v1074_v9 = vsel %vm515_vm2, %v2931_v17, 0.0 }
 0x393   : > { %1986 = vmatprep.subr.bf16.mxu0 %v2428_v28  ;;  %v1120_v23 = vpack.c.bf16 %v2931_v17, %v2936_v22 }
 0x397   : > { %1971 = vmatmul.mubr.msk.bf16.vlgmr.msra.gmra.mrb[28].mxu1 %vm515_vm2, %v1120_v23 }
 0x398   : > { %1981 = vmatpush3.bf16.msra.mxu1 %v1361_v53  ;;  %1982 = vmatprep.mubr.msk.bf16.mxu1 %vm2430_vm1, %v2428_v28 }
 0x399   : > { %1992 = vmatprep.subr.bf16.mxu1 %v2428_v28 }
 0x3e2   : > { %v989_v24 = vpop.xlane.xlu1 %988 }
 0x3e3   : > { %v1015_v29 = vsub.f32 %v2856_v14, %v989_v24 }
 0x3e4   : > { %v992_v30 = vpop.xlane.xlu0 %991 }
 0x3e5   : > { %v1041_v32 = vmul.f32 1.442695, %v1015_v29  ;;  %v1016_v33 = vsub.f32 %v2860_v18, %v992_v30 }
 0x3e6   : > { %v983_v36 = vpop.xlane.xlu1 %982 }
 0x3e7   : > { %v1043_v37 = vmul.f32 1.442695, %v1016_v33  ;;  %v1013_v12 = vsub.f32 %v2863_v21, %v983_v36  ;;  %2153 = vpow2.f32 %v1041_v32 }
 0x3e8   : > { %v986_v38 = vpop.xlane.xlu0 %985 }
 0x3e9   : > { %2155 = vpow2.f32 %v1043_v37  ;;  %v1037_v39 = vmul.f32 1.442695, %v1013_v12  ;;  %v1014_v40 = vsub.f32 %v2868_v25, %v986_v38 }
 0x3ea   : > { %v1001_v27 = vpop.xlane.xlu1 %1000 }
 0x3eb   : > { %2157 = vpow2.f32 %v1037_v39  ;;  %v1039_v45 = vmul.f32 1.442695, %v1014_v40  ;;  %v1019_v48 = vsub.f32 %v2874_v41, %v1001_v27 }
 0x3ec   : > { %v1004_v14 = vpop.xlane.xlu0 %1003 }
 0x3ed   : > { %2159 = vpow2.f32 %v1039_v45  ;;  %v1049_v50 = vmul.f32 1.442695, %v1019_v48  ;;  %v1020_v18 = vsub.f32 %v2878_v42, %v1004_v14 }
 0x3ee   : > { %v995_v51 = vpop.xlane.xlu1 %994 }
 0x3ef   : > { %v1051_v52 = vmul.f32 1.442695, %v1020_v18  ;;  %v1017_v21 = vsub.f32 %v2881_v44, %v995_v51  ;;  %2161 = vpow2.f32 %v1049_v50 }
 0x3f0   : > { %v998_v20 = vpop.xlane.xlu0 %997 }
 0x3f1   : > { %2163 = vpow2.f32 %v1051_v52  ;;  %v1045_v53 = vmul.f32 1.442695, %v1017_v21  ;;  %v1018_v25 = vsub.f32 %v2886_v46, %v998_v20  ;;  %v2154_v54 = vpop.eup %2153 }
 0x3f2   : > { %v1455_v58 = vpop.permute.xlu1 %1454  ;;  %v1083_v0 = vsel %vm515_vm2, %v2154_v54, 0.0 }
 0x3f3   : > { %v2156_v26 = vpop.eup %2155  ;;  %2165 = vpow2.f32 %v1045_v53  ;;  %v1047_v55 = vmul.f32 1.442695, %v1018_v25 }
 0x3f4   : > { %v1122_v41 = vpack.c.bf16 %v2156_v26, %v2154_v54  ;;  %v1408_v63 = vpop.permute.xlu0 %1407  ;;  %v1086_v3 = vsel %vm515_vm2, %v2156_v26, 0.0 }
 0x3f5   : > { %v2158_v56 = vpop.eup %2157  ;;  %2167 = vpow2.f32 %v1047_v55 }
 0x3f6   : > { %1983 = vmatmul.mubr.msk.bf16.vlgmr.msra.gmra.mrb[32].mxu1 %vm515_vm2, %v1122_v41  ;;  %v1077_v42 = vsel %vm515_vm2, %v2158_v56, 0.0 }
 0x3f7   : > { %v2160_v60 = vpop.eup %2159  ;;  %1993 = vmatpush3.bf16.msra.mxu1 %v1455_v58  ;;  %1078 = vadd.xlane.f32.xlu0 %v1077_v42 }
 0x3f8   : > { %v1080_v44 = vsel %vm515_vm2, %v2160_v60, 0.0  ;;  %v1121_v62 = vpack.c.bf16 %v2160_v60, %v2158_v56  ;;  %1994 = vmatprep.mubr.msk.bf16.mxu1 %vm2430_vm1, %v2428_v28 }
 0x3f9   : > { %1081 = vadd.xlane.f32.xlu1 %v1080_v44  ;;  %v2162_v46 = vpop.eup %2161 }
 0x3fa   : > { %1977 = vmatmul.mubr.msk.bf16.vlgmr.msra.gmra.mrb[24].mxu0 %vm515_vm2, %v1121_v62  ;;  %v1095_v6 = vsel %vm515_vm2, %v2162_v46, 0.0 }
 0x3fb   : > { %v2164_v1 = vpop.eup %2163  ;;  %1987 = vmatpush3.bf16.msra.mxu0 %v1408_v63  ;;  %1084 = vadd.xlane.f32.xlu0 %v1083_v0 }
 0x3fc   : > { %v1124_v2 = vpack.c.bf16 %v2164_v1, %v2162_v46  ;;  %1988 = vmatprep.mubr.msk.bf16.mxu0 %vm2430_vm1, %v2428_v28  ;;  %v1053_v28 = vsel %vm515_vm2, %v2904_v8, 0.0  ;;  %v1098_v35 = vsel %vm515_vm2, %v2164_v1, 0.0  ;;  %v1071_v8 = vsel %vm515_vm2, %v2936_v22, 0.0 }
 0x3fd   : > { %v2166_v57 = vpop.eup %2165 }
 0x3fe   : > { %1995 = vmatmul.mubr.msk.bf16.vlgmr.msra.gmra.mrb[36].mxu1 %vm515_vm2, %v1124_v2  ;;  %v1089_v19 = vsel %vm515_vm2, %v2166_v57, 0.0 }
 0x3ff   : > { %v2168_v4 = vpop.eup %2167  ;;  %1087 = vadd.xlane.f32.xlu0 %v1086_v3  ;;  %1090 = vadd.xlane.f32.xlu1 %v1089_v19 }
 0x400   : > { %v1123_v5 = vpack.c.bf16 %v2168_v4, %v2166_v57  ;;  %v1092_v34 = vsel %vm515_vm2, %v2168_v4, 0.0 }
 0x402   : > { %1989 = vmatmul.mubr.msk.bf16.vlgmr.msra.gmra.mrb[28].mxu0 %vm515_vm2, %v1123_v5  ;;  %v2135_v5 = vld [vmem:[#allocation8] sm:$0xff]  }
 0x403   : > { %1096 = vadd.xlane.f32.xlu1 %v1095_v6  ;;  %1093 = vadd.xlane.f32.xlu0 %v1092_v34  ;;  %v2136_v6 = vld [vmem:[#allocation8 + $0x8] sm:$0xff]  }
 0x404   : > { %1998 = vmatprep.subr.bf16.mxu0 %v2135_v5 }
 0x405   : > { %1999 = vmatpush3.bf16.msra.mxu0 %v2135_v5 }
 0x406   : > { %2000 = vmatprep.subr.bf16.mxu0 %v2136_v6 }
 0x407   : > { %1054 = vadd.xlane.f32.xlu1 %v1053_v28  ;;  %1099 = vadd.xlane.f32.xlu0 %v1098_v35 }
 0x409   : > { %2001 = vmatpush3.bf16.msra.mxu0 %v2136_v6 }
 0x40b   : > { %1060 = vadd.xlane.f32.xlu1 %v1059_v49  ;;  %1057 = vadd.xlane.f32.xlu0 %v1056_v7 }
 0x40f   : > { %1066 = vadd.xlane.f32.xlu1 %v1065_v43  ;;  %1063 = vadd.xlane.f32.xlu0 %v1062_v31 }
 0x413   : > { %1072 = vadd.xlane.f32.xlu1 %v1071_v8  ;;  %1069 = vadd.xlane.f32.xlu0 %v1068_v10 }
 0x417   : > { %1075 = vadd.xlane.f32.xlu0 %v1074_v9 }
 0x45c   : > { %v1165_v47 = vpop.f32.mrb[16].mxu0 }
 0x45d   : > { %v1954_v59 = vpop.f32.mrb[17].mxu0 }
 0x45e   : > { %v1168_v13 = vpop.f32.mrb[18].mxu0 }
 0x45f   : > { %v1955_v15 = vpop.f32.mrb[19].mxu0 }
 0x462   : > { %v1212_v16 = vpop.f32.mrb[24].mxu1 }
 0x463   : > { %v1960_v61 = vpop.f32.mrb[25].mxu1 }
 0x464   : > { %v1215_v23 = vpop.f32.mrb[26].mxu1  ;;  %v1259_v24 = vpop.f32.mrb[20].mxu0 }
 0x465   : > { %v1961_v29 = vpop.f32.mrb[27].mxu1  ;;  %v1966_v30 = vpop.f32.mrb[21].mxu0 }
 0x466   : > { %v1262_v22 = vpop.f32.mrb[22].mxu0 }
 0x467   : > { %v1967_v32 = vpop.f32.mrb[23].mxu0 }
 0x46a   : > { %v1306_v33 = vpop.f32.mrb[28].mxu1 }
 0x46b   : > { %v1972_v11 = vpop.f32.mrb[29].mxu1 }
 0x46c   : > { %v1309_v36 = vpop.f32.mrb[30].mxu1 }
 0x46d   : > { %v1973_v37 = vpop.f32.mrb[31].mxu1 }
 0x484   : > { %v1079_v12 = vpop.xlane.xlu0 %1078 }
 0x486   : > { %v1082_v38 = vpop.xlane.xlu1 %1081 }
 0x488   : > { %v1085_v17 = vpop.xlane.xlu0 %1084 }
 0x48c   : > { %v1091_v39 = vpop.xlane.xlu1 %1090  ;;  %v1088_v40 = vpop.xlane.xlu0 %1087 }
 0x490   : > { %v1097_v27 = vpop.xlane.xlu1 %1096  ;;  %v1094_v45 = vpop.xlane.xlu0 %1093 }
 0x494   : > { %v1055_v48 = vpop.xlane.xlu1 %1054  ;;  %v1100_v14 = vpop.xlane.xlu0 %1099 }
 0x495   : > { %2169 = vrcp.f32 %v1055_v48 }
 0x498   : > { %v1061_v50 = vpop.xlane.xlu1 %1060  ;;  %v1058_v18 = vpop.xlane.xlu0 %1057 }
 0x499   : > { %2171 = vrcp.f32 %v1058_v18 }
 0x49a   : > { %2173 = vrcp.f32 %v1061_v50 }
 0x49c   : > { %v1067_v51 = vpop.xlane.xlu1 %1066  ;;  %v1064_v52 = vpop.xlane.xlu0 %1063 }
 0x49d   : > { %2175 = vrcp.f32 %v1064_v52 }
 0x49e   : > { %2177 = vrcp.f32 %v1067_v51 }
 0x49f   : > { %v2170_v53 = vpop.eup %2169 }
 0x4a0   : > { %v1073_v21 = vpop.xlane.xlu1 %1072  ;;  %v1070_v20 = vpop.xlane.xlu0 %1069  ;;  %v1501_v26 = vmul.f32 %v2170_v53, %v1165_v47 }
 0x4a1   : > { %2179 = vrcp.f32 %v1070_v20 }
 0x4a2   : > { %2181 = vrcp.f32 %v1073_v21 }
 0x4a3   : > { %v2172_v25 = vpop.eup %2171 }
 0x4a4   : > { %v1076_v54 = vpop.xlane.xlu0 %1075  ;;  %v1502_v55 = vmul.f32 %v2172_v25, %v1168_v13  ;;  %v2174_v41 = vpop.eup %2173 }
 0x4a5   : > { %2183 = vrcp.f32 %v1076_v54  ;;  %v1503_v42 = vmul.f32 %v2174_v41, %v1212_v16 }
 0x4a6   : > { %v1517_v56 = vpack.c.bf16 %v1502_v55, %v1501_v26  ;;  %2185 = vrcp.f32 %v1085_v17  ;;  %v1829_v26 = vld [vmem:[%s3059_s4] ss:$0 sm:$0xff] }
 0x4a7   : > { %v2176_v58 = vpop.eup %2175  ;;  %2187 = vrcp.f32 %v1088_v40 }
 0x4a8   : > { %v1504_v60 = vmul.f32 %v2176_v58, %v1215_v23  ;;  %1521 = vst.msk [vmem:[#allocation2] sm:$0xff] %vm515_vm2, %v1517_v56  ;;  %v2178_v44 = vpop.eup %2177  ;;  %2189 = vrcp.f32 %v1079_v12 }
 0x4a9   : > { %v1505_v0 = vmul.f32 %v2178_v44, %v1259_v24  ;;  %2191 = vrcp.f32 %v1082_v38 }
 0x4aa   : > { %v1518_v62 = vpack.c.bf16 %v1504_v60, %v1503_v42  ;;  %2193 = vrcp.f32 %v1097_v27 }
 0x4ab   : > { %v2180_v46 = vpop.eup %2179  ;;  %2195 = vrcp.f32 %v1100_v14 }
 0x4ac   : > { %v2182_v63 = vpop.eup %2181  ;;  %v1506_v1 = vmul.f32 %v2180_v46, %v1262_v22  ;;  %1522 = vst.msk [vmem:[#allocation2 + $0x8] sm:$0xff] %vm515_vm2, %v1518_v62  ;;  %2197 = vrcp.f32 %v1091_v39 }
 0x4ad   : > { %v1507_v3 = vmul.f32 %v2182_v63, %v1306_v33  ;;  %2199 = vrcp.f32 %v1094_v45 }
 0x4ae   : > { %v1519_v57 = vpack.c.bf16 %v1506_v1, %v1505_v0 }
 0x4af   : > { %v2184_v2 = vpop.eup %2183 }
 0x4b0   : > { %v1508_v19 = vmul.f32 %v2184_v2, %v1309_v36  ;;  %1523 = vst.msk [vmem:[#allocation2 + $0x10] sm:$0xff] %vm515_vm2, %v1519_v57  ;;  %v2186_v28 = vpop.eup %2185 }
 0x4b1   : > { %v2188_v49 = vpop.eup %2187 }
 0x4b2   : > { %v1520_v4 = vpack.c.bf16 %v1508_v19, %v1507_v3  ;;  %v2190_v10 = vpop.eup %2189 }
 0x4b3   : > { %v2192_v15 = vpop.eup %2191 }
 0x4b4   : > { %1524 = vst.msk [vmem:[#allocation2 + $0x18] sm:$0xff] %vm515_vm2, %v1520_v4  ;;  %v2194_v29 = vpop.eup %2193 }
 0x4b5   : > { %v2196_v32 = vpop.eup %2195 }
 0x4b6   : > { %v2198_v38 = vpop.eup %2197 }
 0x4b7   : > { %v2200_v40 = vpop.eup %2199 }
 0x4c9   : > { %v1400_v34 = vpop.f32.mrb[32].mxu1 }
 0x4ca   : > { %v1984_v35 = vpop.f32.mrb[33].mxu1  ;;  %v1511_v43 = vmul.f32 %v2186_v28, %v1400_v34 }
 0x4cb   : > { %v1403_v7 = vpop.f32.mrb[34].mxu1 }
 0x4cc   : > { %v1512_v31 = vmul.f32 %v2188_v49, %v1403_v7  ;;  %v1985_v8 = vpop.f32.mrb[35].mxu1 }
 0x4cd   : > { %v1353_v9 = vpop.f32.mrb[24].mxu0 }
 0x4ce   : > { %v1526_v47 = vpack.c.bf16 %v1512_v31, %v1511_v43  ;;  %v1509_v59 = vmul.f32 %v2190_v10, %v1353_v9  ;;  %v1978_v13 = vpop.f32.mrb[25].mxu0 }
 0x4cf   : > { %v1356_v16 = vpop.f32.mrb[26].mxu0 }
 0x4d0   : > { %v1510_v61 = vmul.f32 %v2192_v15, %v1356_v16  ;;  %v1979_v23 = vpop.f32.mrb[27].mxu0  ;;  %1535 = vrot.lane.b32.xlu0 %v1526_v47, %s2433_s1 }
 0x4d1   : > { %v1494_v24 = vpop.f32.mrb[36].mxu1 }
 0x4d2   : > { %v1525_v30 = vpack.c.bf16 %v1510_v61, %v1509_v59  ;;  %v1996_v22 = vpop.f32.mrb[37].mxu1  ;;  %v1515_v11 = vmul.f32 %v2194_v29, %v1494_v24 }
 0x4d3   : > { %v1497_v33 = vpop.f32.mrb[38].mxu1 }
 0x4d4   : > { %v1516_v36 = vmul.f32 %v2196_v32, %v1497_v33  ;;  %v1997_v37 = vpop.f32.mrb[39].mxu1  ;;  %1533 = vrot.lane.b32.xlu1 %v1525_v30, %s2433_s1 }
 0x4d5   : > { %v1447_v12 = vpop.f32.mrb[28].mxu0 }
 0x4d6   : > { %v1528_v17 = vpack.c.bf16 %v1516_v36, %v1515_v11  ;;  %v1990_v39 = vpop.f32.mrb[29].mxu0  ;;  %v1513_v45 = vmul.f32 %v2198_v38, %v1447_v12 }
 0x4d7   : > { %v1450_v27 = vpop.f32.mrb[30].mxu0 }
 0x4d8   : > { %v1514_v48 = vmul.f32 %v2200_v40, %v1450_v27  ;;  %v1991_v14 = vpop.f32.mrb[31].mxu0 }
 0x4da   : > { %v1527_v50 = vpack.c.bf16 %v1514_v48, %v1513_v45 }
 0x4dc   : > { %1537 = vrot.lane.b32.xlu1 %v1527_v50, %s2433_s1 }
 0x4e0   : > { %1539 = vrot.lane.b32.xlu1 %v1528_v17, %s2433_s1 }
 0x542   : > { %v1536_v18 = vpop.permute.xlu0 %1535 }
 0x543   : > { %1547 = vst.msk [vmem:[#allocation2 + $0x8] sm:$0xff] %vm1545_vm3, %v1536_v18 }
 0x546   : > { %v1534_v51 = vpop.permute.xlu1 %1533 }
 0x547   : > { %1546 = vst.msk [vmem:[#allocation2] sm:$0xff] %vm1545_vm3, %v1534_v51 }
 0x54a   : > { %v1551_v20 = vld [vmem:[#allocation2 + $0x8] sm:$0xff] }
 0x54e   : > { %v1538_v52 = vpop.permute.xlu1 %1537  ;;  %v1550_v21 = vld [vmem:[#allocation2] sm:$0xff] }
 0x54f   : > { %1548 = vst.msk [vmem:[#allocation2 + $0x10] sm:$0xff] %vm1545_vm3, %v1538_v52  ;;  %2002 = vmatprep.mubr.msk.bf16.mxu0 %vm394_vm0, %v1550_v21 }
 0x550   : > { %2003 = vmatmul.mubr.msk.bf16.vlgmr.msra.gmra.mrb[32].mxu0 %vm394_vm0, %v1551_v20 }
 0x552   : > { %v1540_v53 = vpop.permute.xlu1 %1539 }
 0x553   : > { %1549 = vst.msk [vmem:[#allocation2 + $0x18] sm:$0xff] %vm1545_vm3, %v1540_v53 }
 0x556   : > { %v1552_v25 = vld [vmem:[#allocation2 + $0x10] sm:$0xff] }
 0x557   : > { %2006 = vmatprep.mubr.msk.bf16.mxu0 %vm394_vm0, %v1552_v25 }
 0x55a   : > { %v1553_v54 = vld [vmem:[#allocation2 + $0x18] sm:$0xff] }
 0x55b   : > { %2007 = vmatmul.mubr.msk.bf16.gmra.mrb[36].mxu0 %vm394_vm0, %v1553_v54 }
 0x623   : > { %v2004_v55 = vpop.f32.mrb[32].mxu0 }
 0x624   : > { %v1632_v41 = vadd.f32 %v2004_v55, %v1829_v26  ;;  %v1623_v56 = vpop.f32.mrb[33].mxu0 }
 0x625   : > { %v1624_v58 = vadd.f32 %v1829_v26, %v1623_v56  ;;  %v2005_v42 = vpop.f32.mrb[34].mxu0 }
 0x626   : > { %1656 = vst.msk [vmem:[%s355_s11 + $0x10] sm:$0xff] %vm394_vm0, %v1632_v41  ;;  %v1635_v60 = vadd.f32 %v2005_v42, %v1829_v26  ;;  %v1626_v44 = vpop.f32.mrb[35].mxu0 }
 0x627   : > { %1654 = vst.msk [vmem:[%s355_s11] sm:$0xff] %vm394_vm0, %v1624_v58  ;;  %v1627_v62 = vadd.f32 %v1829_v26, %v1626_v44 }
 0x628   : > { %1657 = vst.msk [vmem:[%s355_s11 + $0x18] sm:$0xff] %vm394_vm0, %v1635_v60 }
 0x629   : > { %1655 = vst.msk [vmem:[%s355_s11 + $0x8] sm:$0xff] %vm394_vm0, %v1627_v62 }
 0x62e   : > { %v2008_v46 = vpop.f32.mrb[36].mxu0 }
 0x62f   : > { %v1648_v63 = vadd.f32 %v2008_v46, %v1829_v26  ;;  %v1639_v0 = vpop.f32.mrb[37].mxu0 }
 0x630   : > { %v1640_v1 = vadd.f32 %v1829_v26, %v1639_v0  ;;  %v2009_v2 = vpop.f32.mrb[38].mxu0 }
 0x631   : > { %1660 = vst.msk [vmem:[%s355_s11 + $0x30] sm:$0xff] %vm394_vm0, %v1648_v63  ;;  %v1651_v57 = vadd.f32 %v2009_v2, %v1829_v26  ;;  %v1642_v3 = vpop.f32.mrb[39].mxu0 }
 0x632   : > { %1658 = vst.msk [vmem:[%s355_s11 + $0x20] sm:$0xff] %vm394_vm0, %v1640_v1  ;;  %v1643_v19 = vadd.f32 %v1829_v26, %v1642_v3 }
 0x633   : > { %1661 = vst.msk [vmem:[%s355_s11 + $0x38] sm:$0xff] %vm394_vm0, %v1651_v57 }
 0x634   : > { %1659 = vst.msk [vmem:[%s355_s11 + $0x28] sm:$0xff] %vm394_vm0, %v1643_v19 }
 0x635   : > { %2356 = shalt.err (!%p2353_p13)
}
 0x636   : > { %s2357_s17 = scalar_lea.hbm %s3006_s10, 1024  ;;  %s2361_s23 = scalar_lea.hbm %s3062_s7, 2048 }
 0x637   : > { %p2358_p9 = scmp.ne.s32.totalorder %s3006_s10, %s2357_s17  ;;  %p2362_p6 = scmp.lt.u32.totalorder %s3006_s10, %s3062_s7 }
 0x638   : > { %p2363_p4 = scmp.lt.u32.totalorder %s2361_s23, %s2357_s17  ;;  %p2365_p10 = scmp.lt.u32.totalorder %s2357_s17, %s3006_s10 }
 0x639   : > { %p2359_p0 = pnand %p2358_p9, %p2655_p3 }
 0x63a   : > { %p2364_p8 = por %p2363_p4, %p2362_p6 }
 0x63b   : > { %p2360_p11 = pneg %p2359_p0 }
 0x63c   : > { %p2366_p5 = por %p2365_p10, %p2364_p8 }
 0x63e   : > { %p2367_p7 = pnand %p2366_p5, %p2360_p11 }
 0x640   : > { %2370 = shalt.err (!%p2367_p7)
}
 0x641   : > { %s2435_s16 = smov 128   ;;  %s2436_s19 = smov 8  }
 0x642   : > { %2032 = dma.vmem_to_hbm [thread:$0]  (%p2655_p3), %s3008_s14, 1024, %s3006_s10, %s1663_s28, %s2435_s16, %s2435_s16, %s2436_s19  }
 0x643 PF: > { %s1692_s30 = sand.u32 1, %s2405_s24   ;;  %p3089_p12 = scmp.ne.s32.totalorder %s3072_s8, 0 }
 0x644   : > { %p3090_p1 = scmp.ge.s32.totalorder %s2417_s27, 2  ;;  %s1693_s9 = scalar_lea.sflag [#allocation5], %s1692_s30 }
 0x646   : > { %p2052_p2 = pnand %p3090_p1, %p3089_p12 }
 0x648   : > { %2400 = dma.done.wait (!%p2052_p2), %s1693_s9, 1024  }
 0x649   : > { %2402 = vsyncadd (!%p2052_p2), %s1693_s9, 4294966272  ;;  %p22_p13 = scmp.ge.s32.totalorder %s2642_s12, 4   ;;  %s3091_s24 = smov %s2409_s25 }
 0x64a   : > { %s3092_s25 = smov %s2413_s26  ;;  %s3093_s26 = smov %s2651_s29 }
 0x64b   : > { %s3094_s27 = smov %s2642_s12  ;;  %24 = sbr.rel (!%p22_p13) target bundleno = 9 (0x9), region = 109 }
 0x652   :  { %1698 = vsyncpa [#allocation4], 1 }
 0x653   :  { %1700 = vsyncpa [#allocation4 + $0x1], 1 }
 0x654   :  { %1701 = vsyncpa [#allocation7], 1 }
 0x655   :  { %1702 = vsyncpa [#allocation10], 1 }
 0x656   :  { %1703 = vsyncpa [#allocation5], 1 }
 0x657   :  { %1705 = vsyncpa [#allocation5 + $0x1], 1 }

</bundles_post_ra>
